<compile_context>
chip_gen: v7x
topology: tpu7x:2x2x1
jax: 0.10.0
libtpu: 0.0.40
codegen_flags: <defaults>
</compile_context>

<pallas_src>
import functools

import jax
import jax.numpy as jnp
from jax.experimental import pallas as pl
from jax.experimental.pallas import tpu as pltpu


# ------------------------------ Pallas kernel ------------------------------ #

def fused_classifier_kernel(p_ref, cw_ref, cb_ref, f1w_ref, f1b_ref,
                            clsw_ref, clsb_ref, o_ref, acc_ref, *, inv_hw):
    """One image per b-step, HW tiled along the (arbitrary) t axis.

    p_ref   : (1, HW_TILE, Kpad)  bf16 im2col patches tile
    cw_ref  : (Kpad, Cout)        bf16 conv weights (im2col layout, K padded)
    cb_ref  : (1, Cout)           f32 conv bias
    f1w_ref : (Cout, FeatPad)     bf16 backbone FC weights (1000 padded -> 1024)
    f1b_ref : (1, FeatPad)        f32 backbone FC bias (zero in padding)
    clsw_ref: (1, FeatPad)        f32 classifier weight row (zero in padding)
    clsb_ref: (1, 1)              f32 classifier bias
    o_ref   : (1, 1, 1)           f32 logit for this image
    acc_ref : (1, Cout)           f32 GAP accumulator (VMEM scratch)
    """
    t = pl.program_id(1)

    @pl.when(t == 0)
    def _init():
        acc_ref[...] = jnp.zeros_like(acc_ref)

    # Conv stem as matmul (im2col patches @ weights) -> ReLU -> partial GAP sum.
    a = jnp.dot(p_ref[0], cw_ref[...], preferred_element_type=jnp.float32)
    a = jnp.maximum(a + cb_ref[...], 0.0)
    acc_ref[...] += jnp.sum(a, axis=0, keepdims=True)

    @pl.when(t == pl.num_programs(1) - 1)
    def _finalize():
        feat = acc_ref[...] * inv_hw                      # (1, Cout) global avg pool
        vec = jnp.dot(feat.astype(jnp.bfloat16), f1w_ref[...],
                      preferred_element_type=jnp.float32) + f1b_ref[...]
        act = jnp.maximum(vec, 0.0)                       # ImageClassifier.activation
        # ImageClassifier.classifier (Linear 1000 -> 1) as VPU mul + lane reduce.
        out = jnp.sum(act * clsw_ref[...], axis=-1, keepdims=True) + clsb_ref[...]
        o_ref[0] = out                                    # (1, 1)


# -------------------------------- Wrapper ----------------------------------- #

def _pick_hw_tile(hw, max_rows=1024):
    """Largest divisor of hw that is a multiple of 8 and <= max_rows."""
    if hw <= max_rows:
        return hw
    for t in range(max_rows, 7, -1):
        if hw % t == 0 and t % 8 == 0:
            return t
    return hw


@jax.jit
def image_classifier_forward(x_nchw, params):
    """x_nchw: [B, 3, H, W] float32 image batch. Returns [B, 1] logits."""
    conv_w, conv_b = params["conv_w"], params["conv_b"]
    fc1_w, fc1_b = params["fc1_w"], params["fc1_b"]
    cls_w, cls_b = params["cls_w"], params["cls_b"]

    B, Cin, H, W = x_nchw.shape
    HW = H * W
    K = 9 * Cin
    kpad = conv_w.shape[0]
    Cout = conv_w.shape[-1]
    feat_pad = fc1_w.shape[-1]

    # --- glue: NCHW -> NHWC, pad=1, im2col (3x3, stride 1), pad K, cast bf16 ---
    x = jnp.transpose(x_nchw, (0, 2, 3, 1))                       # [B, H, W, Cin]
    xp = jnp.pad(x, ((0, 0), (1, 1), (1, 1), (0, 0)))
    cols = [xp[:, ky:ky + H, kx:kx + W, :] for ky in range(3) for kx in range(3)]
    patches = jnp.concatenate(cols, axis=-1).reshape(B, HW, K)
    patches = jnp.pad(patches, ((0, 0), (0, 0), (0, kpad - K))).astype(jnp.bfloat16)

    hw_tile = _pick_hw_tile(HW)
    n_hw = HW // hw_tile

    kernel = functools.partial(fused_classifier_kernel, inv_hw=1.0 / HW)

    out = pl.pallas_call(
        kernel,
        out_shape=jax.ShapeDtypeStruct((B, 1, 1), jnp.float32),
        grid_spec=pltpu.PrefetchScalarGridSpec(
            num_scalar_prefetch=0,
            grid=(B, n_hw),
            in_specs=[
                pl.BlockSpec((1, hw_tile, kpad), lambda b, t: (b, t, 0)),
                pl.BlockSpec((kpad, Cout), lambda b, t: (0, 0)),
                pl.BlockSpec((1, Cout), lambda b, t: (0, 0)),
                pl.BlockSpec((Cout, feat_pad), lambda b, t: (0, 0)),
                pl.BlockSpec((1, feat_pad), lambda b, t: (0, 0)),
                pl.BlockSpec((1, feat_pad), lambda b, t: (0, 0)),
                pl.BlockSpec((1, 1), lambda b, t: (0, 0)),
            ],
            out_specs=pl.BlockSpec((1, 1, 1), lambda b, t: (b, 0, 0)),
            scratch_shapes=[pltpu.VMEM((1, Cout), jnp.float32)],
        ),
        compiler_params=pltpu.CompilerParams(
            dimension_semantics=("parallel", "arbitrary"),
            vmem_limit_bytes=32 * 1024 * 1024,
            allow_input_fusion=[True, False, False, False, False, False, False],
        ),
    )(patches, conv_w, conv_b, fc1_w, fc1_b, cls_w, cls_b)

    return out.reshape(B, 1)


# --------------------------- Deterministic params --------------------------- #

def init_params(key, cin=3, cconv=512, feat_dim=1000, n_classes=2,
                kpad=32, feat_pad=1024):
    n_out = 1 if n_classes == 2 else n_classes
    k1, k2, k3, k4, k5, k6 = jax.random.split(key, 6)
    K = 9 * cin

    # synthetic conv stem: PyTorch-style (Cout, Cin, 3, 3) -> im2col (9*Cin, Cout),
    # zero-padded on the contraction dim to kpad, stored bf16 for the MXU.
    conv_w_t = jax.random.normal(k1, (cconv, cin, 3, 3), jnp.float32) * 0.05
    conv_w = jnp.transpose(conv_w_t, (2, 3, 1, 0)).reshape(K, cconv)
    conv_w = jnp.pad(conv_w, ((0, kpad - K), (0, 0))).astype(jnp.bfloat16)
    conv_b = jax.random.normal(k2, (1, cconv), jnp.float32) * 0.01

    # synthetic backbone FC: Linear(cconv, 1000); torch layout (out, in) -> (in, out),
    # feature dim zero-padded 1000 -> feat_pad (lane dense), bf16.
    fc1_w_t = jax.random.normal(k3, (feat_dim, cconv), jnp.float32) * 0.02
    fc1_w = jnp.pad(fc1_w_t.T, ((0, 0), (0, feat_pad - feat_dim))).astype(jnp.bfloat16)
    fc1_b = jnp.pad(jax.random.normal(k4, (1, feat_dim), jnp.float32) * 0.01,
                    ((0, 0), (0, feat_pad - feat_dim)))

    # ImageClassifier.classifier: Linear(1000, 1) (n_classes == 2), kept as a
    # (1, feat_pad) row (zeros in padding) so the kernel uses a VPU mul+reduce.
    # TODO(synk): for n_classes > 2, store cls_w as (feat_pad, n_out) and use an MXU matmul.
    cls_w_t = jax.random.normal(k5, (n_out, feat_dim), jnp.float32) * 0.02
    cls_w = jnp.pad(cls_w_t, ((0, 0), (0, feat_pad - feat_dim)))
    cls_b = jax.random.normal(k6, (1, n_out), jnp.float32) * 0.01

    return {
        "conv_w": conv_w, "conv_b": conv_b,
        "fc1_w": fc1_w, "fc1_b": fc1_b,
        "cls_w": cls_w, "cls_b": cls_b,
    }


if __name__ == "__main__":
    key = jax.random.PRNGKey(0)
    k_params, k_x = jax.random.split(key)

    params = init_params(k_params)
    # small NCHW image batch, matching the module's expected input convention
    x = jax.random.normal(k_x, (2, 3, 16, 16), jnp.float32)

    out = image_classifier_forward(x, params)
    jax.block_until_ready(out)

    assert out.shape == (2, 1), out.shape
    assert out.dtype == jnp.float32
    print("KERNEL_OK")
</pallas_src>

<mosaic_0001>
module attributes {stable_mosaic.version = 11 : i64} {
  func.func @fused_classifier_kernel(%arg0: i32, %arg1: i32, %arg2: memref<1x256x32xbf16, #tpu.memory_space<vmem>>, %arg3: memref<32x512xbf16, #tpu.memory_space<vmem>>, %arg4: memref<1x512xf32, #tpu.memory_space<vmem>>, %arg5: memref<512x1024xbf16, #tpu.memory_space<vmem>>, %arg6: memref<1x1024xf32, #tpu.memory_space<vmem>>, %arg7: memref<1x1024xf32, #tpu.memory_space<vmem>>, %arg8: memref<1x1xf32, #tpu.memory_space<vmem>>, %arg9: memref<1x1x1xf32, #tpu.memory_space<vmem>>, %arg10: memref<1x512xf32, #tpu.memory_space<vmem>>) attributes {dimension_semantics = [#tpu.dimension_semantics<parallel>, #tpu.dimension_semantics<arbitrary>], iteration_bounds = array<i64: 2, 1>, scalar_prefetch = 0 : i64, scratch_operands = 1 : i64, tpu.core_type = #tpu.core_type<tc>, window_params = [{transform_indices = @transform_0, window_bounds = array<i64: 1, 256, 32>}, {pipeline_mode = #tpu.pipeline_mode<synchronous>, transform_indices = @transform_1, window_bounds = array<i64: 32, 512>}, {pipeline_mode = #tpu.pipeline_mode<synchronous>, transform_indices = @transform_2, window_bounds = array<i64: 1, 512>}, {pipeline_mode = #tpu.pipeline_mode<synchronous>, transform_indices = @transform_3, window_bounds = array<i64: 512, 1024>}, {pipeline_mode = #tpu.pipeline_mode<synchronous>, transform_indices = @transform_4, window_bounds = array<i64: 1, 1024>}, {pipeline_mode = #tpu.pipeline_mode<synchronous>, transform_indices = @transform_5, window_bounds = array<i64: 1, 1024>}, {pipeline_mode = #tpu.pipeline_mode<synchronous>, transform_indices = @transform_6, window_bounds = array<i64: 1, 1>}, {transform_indices = @transform_7, window_bounds = array<i64: 1, 1, 1>}]} {
    %c0_i32 = arith.constant 0 : i32
    %0 = arith.cmpi eq, %arg1, %c0_i32 : i32
    %1 = arith.extui %0 : i1 to i32
    %c0_i32_0 = arith.constant 0 : i32
    %2 = arith.cmpi ne, %1, %c0_i32_0 : i32
    scf.if %2 {
      %cst_15 = arith.constant 0.000000e+00 : f32
      %20 = vector.broadcast %cst_15 : f32 to vector<1x512xf32>
      %c0_16 = arith.constant 0 : index
      %c0_17 = arith.constant 0 : index
      %21 = vector.load %arg10[%c0_16, %c0_17] : memref<1x512xf32, #tpu.memory_space<vmem>>, vector<1x512xf32>
      tpu.vector_store %arg10[%c0_16, %c0_17], %20 {strides = array<i32>} : memref<1x512xf32, #tpu.memory_space<vmem>>, vector<1x512xf32>,
    } else {
    }
    %c0 = arith.constant 0 : index
    %c0_1 = arith.constant 0 : index
    %c0_2 = arith.constant 0 : index
    %3 = vector.load %arg2[%c0, %c0_1, %c0_2] : memref<1x256x32xbf16, #tpu.memory_space<vmem>>, vector<1x256x32xbf16>
    %4 = vector.shape_cast %3 : vector<1x256x32xbf16> to vector<256x32xbf16>
    %c0_3 = arith.constant 0 : index
    %c0_4 = arith.constant 0 : index
    %5 = vector.load %arg3[%c0_3, %c0_4] : memref<32x512xbf16, #tpu.memory_space<vmem>>, vector<32x512xbf16>
    %cst = arith.constant dense<0.000000e+00> : vector<256x512xf32>
    %6 = tpu.matmul %4, %5, %cst {dimension_numbers = #tpu.dot_dimension_numbers<[1], [0], [0], [1], [0, 0, 1, 1], [], []>} : vector<256x32xbf16>, vector<32x512xbf16>, vector<256x512xf32> -> vector<256x512xf32>
    %c0_5 = arith.constant 0 : index
    %c0_6 = arith.constant 0 : index
    %7 = vector.load %arg4[%c0_5, %c0_6] : memref<1x512xf32, #tpu.memory_space<vmem>>, vector<1x512xf32>
    %8 = vector.broadcast %7 : vector<1x512xf32> to vector<256x512xf32>
    %9 = arith.addf %6, %8 : vector<256x512xf32>
    %cst_7 = arith.constant 0.000000e+00 : f32
    %10 = vector.broadcast %cst_7 : f32 to vector<256x512xf32>
    %11 = arith.maximumf %9, %10 : vector<256x512xf32>
    %c0_8 = arith.constant 0 : index
    %c0_9 = arith.constant 0 : index
    %12 = vector.load %arg10[%c0_8, %c0_9] : memref<1x512xf32, #tpu.memory_space<vmem>>, vector<1x512xf32>
    %cst_10 = arith.constant dense<0.000000e+00> : vector<512xf32>
    %13 = vector.multi_reduction <add>, %11, %cst_10 [0] : vector<256x512xf32> to vector<512xf32>
    %14 = vector.shape_cast %13 : vector<512xf32> to vector<1x512xf32>
    %15 = arith.addf %12, %14 : vector<1x512xf32>
    %c0_11 = arith.constant 0 : index
    %c0_12 = arith.constant 0 : index
    %16 = vector.load %arg10[%c0_11, %c0_12] : memref<1x512xf32, #tpu.memory_space<vmem>>, vector<1x512xf32>
    tpu.vector_store %arg10[%c0_11, %c0_12], %15 {strides = array<i32>} : memref<1x512xf32, #tpu.memory_space<vmem>>, vector<1x512xf32>,
    %c0_i32_13 = arith.constant 0 : i32
    %17 = arith.cmpi eq, %arg1, %c0_i32_13 : i32
    %18 = arith.extui %17 : i1 to i32
    %c0_i32_14 = arith.constant 0 : i32
    %19 = arith.cmpi ne, %18, %c0_i32_14 : i32
    scf.if %19 {
      %c0_15 = arith.constant 0 : index
      %c0_16 = arith.constant 0 : index
      %20 = vector.load %arg10[%c0_15, %c0_16] : memref<1x512xf32, #tpu.memory_space<vmem>>, vector<1x512xf32>
      %cst_17 = arith.constant 3.906250e-03 : f32
      %21 = vector.broadcast %cst_17 : f32 to vector<1x512xf32>
      %22 = arith.mulf %20, %21 : vector<1x512xf32>
      %23 = arith.truncf %22 : vector<1x512xf32> to vector<1x512xbf16>
      %c0_18 = arith.constant 0 : index
      %c0_19 = arith.constant 0 : index
      %24 = vector.load %arg5[%c0_18, %c0_19] : memref<512x1024xbf16, #tpu.memory_space<vmem>>, vector<512x1024xbf16>
      %cst_20 = arith.constant dense<0.000000e+00> : vector<1x1024xf32>
      %25 = tpu.matmul %23, %24, %cst_20 {dimension_numbers = #tpu.dot_dimension_numbers<[1], [0], [0], [1], [0, 0, 1, 1], [], []>} : vector<1x512xbf16>, vector<512x1024xbf16>, vector<1x1024xf32> -> vector<1x1024xf32>
      %c0_21 = arith.constant 0 : index
      %c0_22 = arith.constant 0 : index
      %26 = vector.load %arg6[%c0_21, %c0_22] : memref<1x1024xf32, #tpu.memory_space<vmem>>, vector<1x1024xf32>
      %27 = arith.addf %25, %26 : vector<1x1024xf32>
      %cst_23 = arith.constant 0.000000e+00 : f32
      %28 = vector.broadcast %cst_23 : f32 to vector<1x1024xf32>
      %29 = arith.maximumf %27, %28 : vector<1x1024xf32>
      %c0_24 = arith.constant 0 : index
      %c0_25 = arith.constant 0 : index
      %30 = vector.load %arg7[%c0_24, %c0_25] : memref<1x1024xf32, #tpu.memory_space<vmem>>, vector<1x1024xf32>
      %31 = arith.mulf %29, %30 : vector<1x1024xf32>
      %cst_26 = arith.constant dense<0.000000e+00> : vector<1xf32>
      %32 = vector.multi_reduction <add>, %31, %cst_26 [1] : vector<1x1024xf32> to vector<1xf32>
      %33 = vector.shape_cast %32 : vector<1xf32> to vector<1x1xf32>
      %c0_27 = arith.constant 0 : index
      %c0_28 = arith.constant 0 : index
      %34 = vector.load %arg8[%c0_27, %c0_28] : memref<1x1xf32, #tpu.memory_space<vmem>>, vector<1x1xf32>
      %35 = arith.addf %33, %34 : vector<1x1xf32>
      %c0_29 = arith.constant 0 : index
      %c0_30 = arith.constant 0 : index
      %c0_31 = arith.constant 0 : index
      %36 = vector.load %arg9[%c0_29, %c0_30, %c0_31] : memref<1x1x1xf32, #tpu.memory_space<vmem>>, vector<1x1x1xf32>
      %37 = vector.shape_cast %36 : vector<1x1x1xf32> to vector<1x1xf32>
      %38 = vector.shape_cast %35 : vector<1x1xf32> to vector<1x1x1xf32>
      tpu.vector_store %arg9[%c0_29, %c0_30, %c0_31], %38 {strides = array<i32>} : memref<1x1x1xf32, #tpu.memory_space<vmem>>, vector<1x1x1xf32>,
    } else {
    }
    return
  }
  func.func @transform_0(%arg0: i32, %arg1: i32) -> (i32, i32, i32) {
    %c0_i32 = arith.constant 0 : i32
    %c0_i32_0 = arith.constant 0 : i32
    return %arg0, %arg1, %c0_i32 : i32, i32, i32
  }
  func.func @transform_1(%arg0: i32, %arg1: i32) -> (i32, i32) {
    %c0_i32 = arith.constant 0 : i32
    %c0_i32_0 = arith.constant 0 : i32
    %c0_i32_1 = arith.constant 0 : i32
    return %c0_i32, %c0_i32_0 : i32, i32
  }
  func.func @transform_2(%arg0: i32, %arg1: i32) -> (i32, i32) {
    %c0_i32 = arith.constant 0 : i32
    %c0_i32_0 = arith.constant 0 : i32
    %c0_i32_1 = arith.constant 0 : i32
    return %c0_i32, %c0_i32_0 : i32, i32
  }
  func.func @transform_3(%arg0: i32, %arg1: i32) -> (i32, i32) {
    %c0_i32 = arith.constant 0 : i32
    %c0_i32_0 = arith.constant 0 : i32
    %c0_i32_1 = arith.constant 0 : i32
    return %c0_i32, %c0_i32_0 : i32, i32
  }
  func.func @transform_4(%arg0: i32, %arg1: i32) -> (i32, i32) {
    %c0_i32 = arith.constant 0 : i32
    %c0_i32_0 = arith.constant 0 : i32
    %c0_i32_1 = arith.constant 0 : i32
    return %c0_i32, %c0_i32_0 : i32, i32
  }
  func.func @transform_5(%arg0: i32, %arg1: i32) -> (i32, i32) {
    %c0_i32 = arith.constant 0 : i32
    %c0_i32_0 = arith.constant 0 : i32
    %c0_i32_1 = arith.constant 0 : i32
    return %c0_i32, %c0_i32_0 : i32, i32
  }
  func.func @transform_6(%arg0: i32, %arg1: i32) -> (i32, i32) {
    %c0_i32 = arith.constant 0 : i32
    %c0_i32_0 = arith.constant 0 : i32
    %c0_i32_1 = arith.constant 0 : i32
    return %c0_i32, %c0_i32_0 : i32, i32
  }
  func.func @transform_7(%arg0: i32, %arg1: i32) -> (i32, i32, i32) {
    %c0_i32 = arith.constant 0 : i32
    %c0_i32_0 = arith.constant 0 : i32
    %c0_i32_1 = arith.constant 0 : i32
    return %arg0, %c0_i32, %c0_i32_0 : i32, i32, i32
  }
}

</mosaic_0001>

<bundles_post_ra>
// kernel: image_classifier_forward.2
= control target key start
LH: loop header
LB: loop body
LE: loop exit
PB: predicated region body
PF: predicated region fallthrough
CT: control target
= control target key end

     0   :  { %s5210_s0 = inlined_call_operand.vmem [shape: bf16[32,512], index: 0, kind: input, shape index: {}]   ;;  %s5211_s1 = inlined_call_operand.vmem [shape: f32[1,512], index: 1, kind: input, shape index: {}]   ;;  %s5212_s2 = inlined_call_operand.hbm [shape: bf16[512,1024], index: 2, kind: input, shape index: {}]   ;;  %s5213_s3 = inlined_call_operand.vmem [shape: f32[1,1024], index: 3, kind: input, shape index: {}]   ;;  %s5214_s4 = inlined_call_operand.vmem [shape: f32[1,1024], index: 4, kind: input, shape index: {}]   ;;  %s5215_s5 = inlined_call_operand.<no memory space> [shape: f32[1,1], index: 5, kind: input, shape index: {}]   ;;  %s5216_s6 = inlined_call_operand.vmem [shape: bf16[2,256,27], index: 6, kind: input, shape index: {}]   ;;  %s5217_s7 = inlined_call_operand.<no memory space> [shape: bf16[], index: 7, kind: input, shape index: {}]   ;;  %s5218_s8 = inlined_call_operand.vmem [shape: f32[2,1,1], index: 8, kind: output, shape index: {}]  }
   0x1   :  { %v13_v0 = vstv %s5217_s7  ;;  %v18_v1 = vstv %s5215_s5 }
   0x2   :  { %v4617_v2 = vunpack.i.l.bf16 %v13_v0  ;;  %19 = vst [vmem:[#allocation8] sm:$0x1] %v18_v1 }
   0x3   :  { %20 = vsyncpa [#allocation10], 0  ;;  %s4619_s9 = smov 0   ;;  %s4621_s10 = smov 0  }
   0x4   :  { %s4623_s11 = smov 0  }
   0x5 LB: > { %s4057_s5 = sadd.s32 4294967295, %s4558_s11   ;;  %s38_s7 = sadd.s32 1, %s4554_s10  ;;  %s4558_s11 = sphi %s4623_s11, %s26_s11   ;;  %s4554_s10 = sphi %s4621_s10, %s5230_s10   ;;  %s4550_s9 = sphi %s4619_s9, %s5229_s9  }
   0x6   : > { %p40_p0 = scmp.ge.s32.totalorder %s38_s7, 2  ;;  %p4059_p1 = scmp.ge.s32.totalorder %s4558_s11, 1 }
   0x7   : > { %p223_p2 = scmp.lt.s32.totalorder %s4558_s11, 3  ;;  %p4644_p4 = scmp.eq.s32.totalorder %s4057_s5, 0 }
   0x8   : > { %s5232_s7 = smov (%p40_p0, %s38_s7), 0  ;;  %s4560_s14 = smov [#allocation9]  }
   0x9   : > { %p4640_p3 = pnand %p4059_p1, %p223_p2  ;;  %s241_s15 = sshll.u32 %s4560_s14, 4  ;;  %s242_s15 = int_to_ptr.vmem [resolvable:$true] %s241_s15 }
   0xa   : > { %s5223_s13 = scalar_select %p4644_p4, 1, 0 }
   0xb   : > { %s5222_s12 = scalar_select %p4640_p3, 1, 0 }
   0xc   : > { %p4440_p5 = pneg %p4640_p3  ;;  %s4504_s19 = scalar_lea.hbm %s5212_s2, 32768 }
   0xd   : > { %p4505_p7 = scmp.ne.s32.totalorder %s5212_s2, %s4504_s19  ;;  %p4511_p11 = scmp.lt.u32.totalorder %s4504_s19, %s5212_s2 }
   0xe   : > { %p4652_p6 = pnand %p4644_p4, %p4440_p5 }
  0x10   : > { %p4506_p8 = pneg %p4652_p6 }
  0x12   : > { %p4507_p9 = pnand %p4506_p8, %p4505_p7 }
  0x14   : > { %p4508_p10 = pneg %p4507_p9 }
  0x16   : > { %p4513_p12 = pnand %p4511_p11, %p4508_p10 }
  0x18   : > { %4516 = shalt.err (!%p4513_p12)
}
  0x19   : > { %s4517_s24 = scalar_lea.vmem %s242_s15, 32768  ;;  %p4525_p2 = scmp.lt.s32.totalorder %s242_s15, %s242_s15 }
  0x1a   : > { %p4518_p13 = scmp.ne.s32.totalorder %s242_s15, %s4517_s24  ;;  %p4526_p5 = scmp.lt.s32.totalorder %s4517_s24, %s4517_s24 }
  0x1c   : > { %p4520_p0 = pnand %p4518_p13, %p4506_p8  ;;  %p4527_p4 = por %p4526_p5, %p4525_p2 }
  0x1e   : > { %p4521_p1 = pneg %p4520_p0 }
  0x20   : > { %p4528_p3 = pnand %p4527_p4, %p4521_p1 }
  0x22   : > { %4531 = shalt.err (!%p4528_p3)
}
  0x23   : > { %s4561_s25 = smov 512   ;;  %s4562_s26 = smov 32  }
  0x24   : > { %4443 = dma.hbm_to_vmem [thread:$0]  (!%p4652_p6), %s5212_s2, 32768, %s242_s15, [#allocation10], %s4561_s25, %s4561_s25, %s4562_s26  }
  0x25   : > { %p5225_p7 = scmp.ne.s32.totalorder %s5222_s12, 0 }
  0x27   : > { %279 = sbr.rel (%p5225_p7) target bundleno = 1011 (0x3f3), region = 48 }
  0x2e   : > { %p5226_p9 = scmp.ne.s32.totalorder %s5223_s13, 0 }
  0x30   : > { %4545 = dma.done.wait (%p5226_p9), [#allocation10], 32768  }
  0x31   : > { %4547 = vsyncadd (%p5226_p9), [#allocation10], 4294934528  ;;  %p314_p3 = scmp.lt.s32.totalorder %s4550_s9, 1  ;;  %v4563_v3 = vmov 0   ;;  %v338_v4 = vlaneseq  ;;  %v4476_v5 = vld [vmem:[%s5210_s0 + $0x4] ss:$16 sps:$4 sm:$0xff]  }
  0x32   : > { %1301 = vmatprep.mubr.bf16.mxu0 %v4563_v3  ;;  %1494 = vmatprep.mubr.bf16.mxu1 %v4563_v3  ;;  %v4478_v6 = vld [vmem:[%s5210_s0 + $0xc] ss:$16 sps:$4 sm:$0xff]   ;;  %v4480_v8 = vld [vmem:[%s5210_s0] ss:$16 sps:$4 sm:$0xff]   ;;  %v4481_v9 = vld [vmem:[%s5210_s0 + $0x8] ss:$16 sps:$4 sm:$0xff]  }
  0x33   : > { %s5234_s9 = smov (!%p314_p3, %s4550_s9), 1  ;;  %v4692_v7 = vand.u32 127, %v338_v4  ;;  %1269 = vmatprep.subr.bf16.mxu0 %v4476_v5  ;;  %1462 = vmatprep.subr.bf16.mxu1 %v4478_v6  ;;  %v4482_v10 = vld [vmem:[%s5210_s0 + $0x24] ss:$16 sps:$4 sm:$0xff]   ;;  %v4484_v11 = vld [vmem:[%s5210_s0 + $0x2c] ss:$16 sps:$4 sm:$0xff]  }
  0x34   : > { %s4411_s29 = sshll.u32 %s5234_s9, 7  ;;  %1270 = vmatpush1.bf16.msra.mxu0 %v4480_v8  ;;  %1463 = vmatpush1.bf16.msra.mxu1 %v4481_v9  ;;  %v4486_v12 = vld [vmem:[%s5210_s0 + $0x20] ss:$16 sps:$4 sm:$0xff]   ;;  %v4487_v13 = vld [vmem:[%s5210_s0 + $0x28] ss:$16 sps:$4 sm:$0xff]   ;;  %v4564_v31 = vmov 0.0   ;;  %s325_s17 = scalar_lea.vmem %s5218_s8, %s5234_s9 }
  0x35   : > { %s4703_s20 = scalar_lea.vmem %s5216_s6, %s4411_s29  ;;  %1271 = vmatprep.subr.bf16.mxu0 %v4482_v10  ;;  %vm341_vm0 = vcmp.lt.s32.totalorder %v4692_v7, 27  ;;  %1464 = vmatprep.subr.bf16.mxu1 %v4484_v11  ;;  %vm1220_vm1 = vcmask 261120   ;;  %vm4973_vm2 = vcmp.lt.s32.totalorder %v338_v4, 512  ;;  %vm3961_vm3 = vcmask 1040384  }
  0x36   : > { %v335_v14 = vld [vmem:[%s4703_s20] sm:$0xff]   ;;  %v4067_v15 = vld [vmem:[%s4703_s20 + $0x8] sm:$0xff]   ;;  %v4069_v20 = vld [vmem:[%s4703_s20 + $0x10] sm:$0xff]   ;;  %1037 = vst.msk [vmem:[#allocation2] sm:$0xf] %vm4973_vm2, %v4564_v31  ;;  %vm3981_vm4 = vcmask 0  }
  0x37   : > { %v336_v16 = vunpack.c.l.bf16 %v335_v14  ;;  %v357_v17 = vunpack.c.h.bf16 %v335_v14  ;;  %v379_v18 = vunpack.c.l.bf16 %v4067_v15  ;;  %v401_v19 = vunpack.c.h.bf16 %v4067_v15  ;;  %v4071_v21 = vld [vmem:[%s4703_s20 + $0x18] sm:$0xff]   ;;  %v4073_v22 = vld [vmem:[%s4703_s20 + $0x20] sm:$0xff]   ;;  %v4075_v36 = vld [vmem:[%s4703_s20 + $0x28] sm:$0xff]  }
  0x38   : > { %v423_v23 = vunpack.c.l.bf16 %v4069_v20  ;;  %v445_v24 = vunpack.c.h.bf16 %v4069_v20  ;;  %v467_v25 = vunpack.c.l.bf16 %v4071_v21  ;;  %v489_v26 = vunpack.c.h.bf16 %v4071_v21  ;;  %1272 = vmatpush1.bf16.msra.mxu0 %v4486_v12  ;;  %1465 = vmatpush1.bf16.msra.mxu1 %v4487_v13  ;;  %v4077_v41 = vld [vmem:[%s4703_s20 + $0x30] sm:$0xff]   ;;  %v4079_v46 = vld [vmem:[%s4703_s20 + $0x38] sm:$0xff]   ;;  %v4081_v59 = vld [vmem:[%s4703_s20 + $0x40] sm:$0xff]  }
  0x39   : > { %v342_v27 = vsel %vm341_vm0, %v336_v16, %v4617_v2  ;;  %v363_v28 = vsel %vm341_vm0, %v357_v17, %v4617_v2  ;;  %v385_v29 = vsel %vm341_vm0, %v379_v18, %v4617_v2  ;;  %v511_v30 = vunpack.c.l.bf16 %v4073_v22  ;;  %v4083_v0 = vld [vmem:[%s4703_s20 + $0x48] sm:$0xff]   ;;  %v4085_v9 = vld [vmem:[%s4703_s20 + $0x50] sm:$0xff]   ;;  %v4087_v10 = vld [vmem:[%s4703_s20 + $0x58] sm:$0xff]  }
  0x3a   : > { %v343_v32 = vpack.c.bf16 %v4564_v31, %v342_v27  ;;  %v365_v33 = vpack.c.bf16 %v4564_v31, %v363_v28  ;;  %v387_v34 = vpack.c.bf16 %v4564_v31, %v385_v29  ;;  %v407_v35 = vsel %vm341_vm0, %v401_v19, %v4617_v2  ;;  %v4089_v15 = vld [vmem:[%s4703_s20 + $0x60] sm:$0xff]  }
  0x3b   : > { %v409_v37 = vpack.c.bf16 %v4564_v31, %v407_v35  ;;  %v429_v38 = vsel %vm341_vm0, %v423_v23, %v4617_v2  ;;  %v451_v39 = vsel %vm341_vm0, %v445_v24, %v4617_v2  ;;  %v473_v40 = vsel %vm341_vm0, %v467_v25, %v4617_v2 }
  0x3c   : > { %345 = vst [vmem:[#allocation11] sm:$0xf] %v343_v32  ;;  %367 = vst [vmem:[#allocation11 + $0x4] sm:$0xf] %v365_v33  ;;  %v431_v42 = vpack.c.bf16 %v4564_v31, %v429_v38  ;;  %v453_v43 = vpack.c.bf16 %v4564_v31, %v451_v39  ;;  %v475_v44 = vpack.c.bf16 %v4564_v31, %v473_v40  ;;  %v533_v49 = vunpack.c.h.bf16 %v4073_v22  ;;  %v4093_v39 = vld [vmem:[%s4703_s20 + $0x70] sm:$0xff]  }
  0x3d   : > { %389 = vst [vmem:[#allocation11 + $0x8] sm:$0xf] %v387_v34  ;;  %v495_v45 = vsel %vm341_vm0, %v489_v26, %v4617_v2  ;;  %411 = vst [vmem:[#allocation11 + $0xc] sm:$0xf] %v409_v37  ;;  %v517_v48 = vsel %vm341_vm0, %v511_v30, %v4617_v2  ;;  %v555_v50 = vunpack.c.l.bf16 %v4075_v36  ;;  %v577_v52 = vunpack.c.h.bf16 %v4075_v36  ;;  %v4091_v34 = vld [vmem:[%s4703_s20 + $0x68] sm:$0xff]  }
  0x3e   : > { %v497_v47 = vpack.c.bf16 %v4564_v31, %v495_v45  ;;  %433 = vst [vmem:[#allocation11 + $0x10] sm:$0xf] %v431_v42  ;;  %455 = vst [vmem:[#allocation11 + $0x14] sm:$0xf] %v453_v43  ;;  %v519_v51 = vpack.c.bf16 %v4564_v31, %v517_v48  ;;  %v599_v53 = vunpack.c.l.bf16 %v4077_v41  ;;  %v621_v54 = vunpack.c.h.bf16 %v4077_v41 }
  0x3f   : > { %477 = vst [vmem:[#allocation11 + $0x18] sm:$0xf] %v475_v44  ;;  %v539_v55 = vsel %vm341_vm0, %v533_v49, %v4617_v2  ;;  %v561_v56 = vsel %vm341_vm0, %v555_v50, %v4617_v2  ;;  %v643_v57 = vunpack.c.l.bf16 %v4079_v46  ;;  %v665_v58 = vunpack.c.h.bf16 %v4079_v46  ;;  %v4095_v44 = vld [vmem:[%s4703_s20 + $0x78] sm:$0xff]  }
  0x40   : > { %499 = vst [vmem:[#allocation11 + $0x1c] sm:$0xf] %v497_v47  ;;  %521 = vst [vmem:[#allocation11 + $0x20] sm:$0xf] %v519_v51  ;;  %v541_v60 = vpack.c.bf16 %v4564_v31, %v539_v55  ;;  %v563_v61 = vpack.c.bf16 %v4564_v31, %v561_v56  ;;  %v583_v62 = vsel %vm341_vm0, %v577_v52, %v4617_v2  ;;  %v687_v14 = vunpack.c.l.bf16 %v4081_v59 }
  0x41   : > { %v605_v63 = vsel %vm341_vm0, %v599_v53, %v4617_v2  ;;  %v585_v1 = vpack.c.bf16 %v4564_v31, %v583_v62  ;;  %v627_v6 = vsel %vm341_vm0, %v621_v54, %v4617_v2  ;;  %v649_v8 = vsel %vm341_vm0, %v643_v57, %v4617_v2 }
  0x42   : > { %v607_v5 = vpack.c.bf16 %v4564_v31, %v605_v63  ;;  %543 = vst [vmem:[#allocation11 + $0x24] sm:$0xf] %v541_v60  ;;  %565 = vst [vmem:[#allocation11 + $0x28] sm:$0xf] %v563_v61  ;;  %v629_v11 = vpack.c.bf16 %v4564_v31, %v627_v6  ;;  %v651_v12 = vpack.c.bf16 %v4564_v31, %v649_v8  ;;  %v709_v18 = vunpack.c.h.bf16 %v4081_v59 }
  0x43   : > { %v671_v13 = vsel %vm341_vm0, %v665_v58, %v4617_v2  ;;  %v4488_v16 = vld [vmem:[#allocation11] sm:$0xff]   ;;  %587 = vst [vmem:[#allocation11 + $0x2c] sm:$0xf] %v585_v1  ;;  %v731_v19 = vunpack.c.l.bf16 %v4083_v0  ;;  %v753_v20 = vunpack.c.h.bf16 %v4083_v0  ;;  %v693_v21 = vsel %vm341_vm0, %v687_v14, %v4617_v2 }
  0x44   : > { %609 = vst [vmem:[#allocation11 + $0x30] sm:$0xf] %v607_v5  ;;  %v673_v17 = vpack.c.bf16 %v4564_v31, %v671_v13  ;;  %631 = vst [vmem:[#allocation11 + $0x34] sm:$0xf] %v629_v11  ;;  %v775_v22 = vunpack.c.l.bf16 %v4085_v9  ;;  %v797_v23 = vunpack.c.h.bf16 %v4085_v9  ;;  %v819_v24 = vunpack.c.l.bf16 %v4087_v10  ;;  %4121 = vmatmul.mubr.msk.bf16.vlgmr.msra.gmra.mrb[0].mxu0 %vm1220_vm1, %v4488_v16  ;;  %4137 = vmatmul.mubr.msk.bf16.vlgmr.msra.gmra.mrb[0].mxu1 %vm1220_vm1, %v4488_v16  ;;  %v4489_v45 = vld [vmem:[#allocation11 + $0x8] sm:$0xff]  }
  0x45   : > { %653 = vst [vmem:[#allocation11 + $0x38] sm:$0xf] %v651_v12  ;;  %v695_v25 = vpack.c.bf16 %v4564_v31, %v693_v21  ;;  %v715_v26 = vsel %vm341_vm0, %v709_v18, %v4617_v2  ;;  %v737_v27 = vsel %vm341_vm0, %v731_v19, %v4617_v2  ;;  %v841_v28 = vunpack.c.h.bf16 %v4087_v10  ;;  %1311 = vmatprep.mubr.bf16.mxu0 %v4563_v3  ;;  %v4490_v10 = vld [vmem:[#allocation11 + $0x10] sm:$0xff]  }
  0x46   : > { %675 = vst [vmem:[#allocation11 + $0x3c] sm:$0xf] %v673_v17  ;;  %1504 = vmatprep.mubr.bf16.mxu1 %v4563_v3  ;;  %v717_v29 = vpack.c.bf16 %v4564_v31, %v715_v26  ;;  %v739_v30 = vpack.c.bf16 %v4564_v31, %v737_v27  ;;  %v759_v32 = vsel %vm341_vm0, %v753_v20, %v4617_v2  ;;  %v863_v33 = vunpack.c.l.bf16 %v4089_v15  ;;  %v1998_v27 = vld [vmem:[#allocation9 + $0x8] sm:$0xff] }
  0x47   : > { %697 = vst [vmem:[#allocation11 + $0x40] sm:$0xf] %v695_v25  ;;  %v761_v35 = vpack.c.bf16 %v4564_v31, %v759_v32  ;;  %v781_v36 = vsel %vm341_vm0, %v775_v22, %v4617_v2  ;;  %v803_v37 = vsel %vm341_vm0, %v797_v23, %v4617_v2  ;;  %v825_v38 = vsel %vm341_vm0, %v819_v24, %v4617_v2  ;;  %v4491_v7 = vld [vmem:[#allocation11 + $0x18] sm:$0xff]   ;;  %v1997_v23 = vld [vmem:[#allocation9] sm:$0xff] }
  0x48   : > { %719 = vst [vmem:[#allocation11 + $0x44] sm:$0xf] %v717_v29  ;;  %741 = vst [vmem:[#allocation11 + $0x48] sm:$0xf] %v739_v30  ;;  %v783_v40 = vpack.c.bf16 %v4564_v31, %v781_v36  ;;  %v805_v41 = vpack.c.bf16 %v4564_v31, %v803_v37  ;;  %v827_v42 = vpack.c.bf16 %v4564_v31, %v825_v38  ;;  %v885_v48 = vunpack.c.h.bf16 %v4089_v15  ;;  %v2001_v24 = vld [vmem:[#allocation9 + $0x20] sm:$0xff]  ;;  %v2010_v36 = vld [vmem:[#allocation9 + $0x68] sm:$0xff] }
  0x49   : > { %v847_v43 = vsel %vm341_vm0, %v841_v28, %v4617_v2  ;;  %763 = vst [vmem:[#allocation11 + $0x4c] sm:$0xf] %v761_v35  ;;  %v869_v47 = vsel %vm341_vm0, %v863_v33, %v4617_v2  ;;  %v907_v49 = vunpack.c.l.bf16 %v4091_v34  ;;  %v929_v51 = vunpack.c.h.bf16 %v4091_v34  ;;  %v4492_v11 = vld [vmem:[#allocation11 + $0x20] sm:$0xff]   ;;  %v2002_v28 = vld [vmem:[#allocation9 + $0x28] sm:$0xff] }
  0x4a   : > { %v849_v46 = vpack.c.bf16 %v4564_v31, %v847_v43  ;;  %785 = vst [vmem:[#allocation11 + $0x50] sm:$0xf] %v783_v40  ;;  %807 = vst [vmem:[#allocation11 + $0x54] sm:$0xf] %v805_v41  ;;  %v871_v50 = vpack.c.bf16 %v4564_v31, %v869_v47  ;;  %v951_v52 = vunpack.c.l.bf16 %v4093_v39  ;;  %v973_v53 = vunpack.c.h.bf16 %v4093_v39  ;;  %v4493_v12 = vld [vmem:[#allocation11 + $0x28] sm:$0xff]   ;;  %v2005_v32 = vld [vmem:[#allocation9 + $0x40] sm:$0xff] }
  0x4b   : > { %829 = vst [vmem:[#allocation11 + $0x58] sm:$0xf] %v827_v42  ;;  %v891_v54 = vsel %vm341_vm0, %v885_v48, %v4617_v2  ;;  %v913_v55 = vsel %vm341_vm0, %v907_v49, %v4617_v2  ;;  %v995_v56 = vunpack.c.l.bf16 %v4095_v44  ;;  %v1017_v57 = vunpack.c.h.bf16 %v4095_v44  ;;  %v4494_v13 = vld [vmem:[#allocation11 + $0x30] sm:$0xff]   ;;  %v2009_v33 = vld [vmem:[#allocation9 + $0x60] sm:$0xff]  ;;  %v2014_v43 = vld [vmem:[#allocation9 + $0x88] sm:$0xff] }
  0x4c   : > { %851 = vst [vmem:[#allocation11 + $0x5c] sm:$0xf] %v849_v46  ;;  %873 = vst [vmem:[#allocation11 + $0x60] sm:$0xf] %v871_v50  ;;  %v893_v58 = vpack.c.bf16 %v4564_v31, %v891_v54  ;;  %v915_v59 = vpack.c.bf16 %v4564_v31, %v913_v55  ;;  %v935_v60 = vsel %vm341_vm0, %v929_v51, %v4617_v2  ;;  %4122 = vmatmul.mubr.msk.bf16.gmra.mrb[4].mxu0 %vm1220_vm1, %v4489_v45  ;;  %v2013_v39 = vld [vmem:[#allocation9 + $0x80] sm:$0xff]  ;;  %v2018_v44 = vld [vmem:[#allocation9 + $0xa8] sm:$0xff] }
  0x4d   : > { %v957_v61 = vsel %vm341_vm0, %v951_v52, %v4617_v2  ;;  %4138 = vmatmul.mubr.msk.bf16.gmra.mrb[4].mxu1 %vm1220_vm1, %v4489_v45  ;;  %v937_v62 = vpack.c.bf16 %v4564_v31, %v935_v60  ;;  %v979_v0 = vsel %vm341_vm0, %v973_v53, %v4617_v2  ;;  %1321 = vmatprep.mubr.bf16.mxu0 %v4563_v3  ;;  %v4495_v14 = vld [vmem:[#allocation11 + $0x38] sm:$0xff]   ;;  %v2017_v40 = vld [vmem:[#allocation9 + $0xa0] sm:$0xff]  ;;  %v2022_v51 = vld [vmem:[#allocation9 + $0xc8] sm:$0xff] }
  0x4e   : > { %v959_v63 = vpack.c.bf16 %v4564_v31, %v957_v61  ;;  %1514 = vmatprep.mubr.bf16.mxu1 %v4563_v3  ;;  %895 = vst [vmem:[#allocation11 + $0x64] sm:$0xf] %v893_v58  ;;  %917 = vst [vmem:[#allocation11 + $0x68] sm:$0xf] %v915_v59  ;;  %v981_v1 = vpack.c.bf16 %v4564_v31, %v979_v0  ;;  %v1001_v5 = vsel %vm341_vm0, %v995_v56, %v4617_v2  ;;  %v2021_v47 = vld [vmem:[#allocation9 + $0xc0] sm:$0xff]  ;;  %v2026_v52 = vld [vmem:[#allocation9 + $0xe8] sm:$0xff] }
  0x4f   : > { %v1023_v6 = vsel %vm341_vm0, %v1017_v57, %v4617_v2  ;;  %939 = vst [vmem:[#allocation11 + $0x6c] sm:$0xf] %v937_v62  ;;  %v1003_v8 = vpack.c.bf16 %v4564_v31, %v1001_v5  ;;  %v4496_v15 = vld [vmem:[#allocation11 + $0x40] sm:$0xff]   ;;  %v4153_v25 = vcombine.low %v1997_v23, %v2001_v24  ;;  %v4154_v26 = vcombine.high %v1997_v23, %v2001_v24  ;;  %v2030_v59 = vld [vmem:[#allocation9 + $0x108] sm:$0xff] }
  0x50   : > { %961 = vst [vmem:[#allocation11 + $0x70] sm:$0xf] %v959_v63  ;;  %v1025_v9 = vpack.c.bf16 %v4564_v31, %v1023_v6  ;;  %983 = vst [vmem:[#allocation11 + $0x74] sm:$0xf] %v981_v1  ;;  %v4497_v16 = vld [vmem:[#allocation11 + $0x48] sm:$0xff]   ;;  %v4155_v29 = vcombine.low %v1998_v27, %v2002_v28  ;;  %v4156_v30 = vcombine.high %v1998_v27, %v2002_v28  ;;  %v2025_v48 = vld [vmem:[#allocation9 + $0xe0] sm:$0xff] }
  0x51   : > { %1005 = vst [vmem:[#allocation11 + $0x78] sm:$0xf] %v1003_v8  ;;  %v4498_v17 = vld [vmem:[#allocation11 + $0x50] sm:$0xff]   ;;  %3575 = vmatprep.subr.bf16.mxu0 %v4154_v26  ;;  %v4161_v34 = vcombine.low %v2005_v32, %v2009_v33  ;;  %v4162_v35 = vcombine.high %v2005_v32, %v2009_v33  ;;  %v4169_v41 = vcombine.low %v2013_v39, %v2017_v40  ;;  %v2029_v55 = vld [vmem:[#allocation9 + $0x100] sm:$0xff]  ;;  %v2034_v60 = vld [vmem:[#allocation9 + $0x128] sm:$0xff] }
  0x52   : > { %1027 = vst [vmem:[#allocation11 + $0x7c] sm:$0xf] %v1025_v9  ;;  %3576 = vmatpush1.bf16.msra.mxu0 %v4153_v25  ;;  %3657 = vmatprep.subr.bf16.mxu1 %v4156_v30  ;;  %v4170_v42 = vcombine.high %v2013_v39, %v2017_v40  ;;  %v4171_v45 = vcombine.low %v2014_v43, %v2018_v44  ;;  %v2033_v56 = vld [vmem:[#allocation9 + $0x120] sm:$0xff]  ;;  %v2038_v6 = vld [vmem:[#allocation9 + $0x148] sm:$0xff] }
  0x53   : > { %v4499_v18 = vld [vmem:[#allocation11 + $0x58] sm:$0xff]   ;;  %3658 = vmatpush1.bf16.msra.mxu1 %v4155_v29  ;;  %3577 = vmatprep.subr.bf16.mxu0 %v4162_v35  ;;  %v4172_v46 = vcombine.high %v2014_v43, %v2018_v44  ;;  %v4177_v49 = vcombine.low %v2021_v47, %v2025_v48  ;;  %v4178_v50 = vcombine.high %v2021_v47, %v2025_v48  ;;  %v2037_v63 = vld [vmem:[#allocation9 + $0x140] sm:$0xff]  ;;  %v2042_v8 = vld [vmem:[#allocation9 + $0x168] sm:$0xff] }
  0x54   : > { %4123 = vmatmul.mubr.msk.bf16.gmra.mrb[8].mxu0 %vm1220_vm1, %v4490_v10  ;;  %v4179_v53 = vcombine.low %v2022_v51, %v2026_v52  ;;  %v4180_v54 = vcombine.high %v2022_v51, %v2026_v52  ;;  %v4185_v57 = vcombine.low %v2029_v55, %v2033_v56  ;;  %v4186_v58 = vcombine.high %v2029_v55, %v2033_v56  ;;  %v2041_v0 = vld [vmem:[#allocation9 + $0x160] sm:$0xff]  ;;  %v2058_v23 = vld [vmem:[#allocation9 + $0x1e8] sm:$0xff] }
  0x55   : > { %4139 = vmatmul.mubr.msk.bf16.gmra.mrb[8].mxu1 %vm1220_vm1, %v4490_v10  ;;  %1331 = vmatprep.mubr.bf16.mxu0 %v4563_v3  ;;  %v4500_v19 = vld [vmem:[#allocation11 + $0x60] sm:$0xff]   ;;  %v4187_v61 = vcombine.low %v2030_v59, %v2034_v60  ;;  %v4188_v62 = vcombine.high %v2030_v59, %v2034_v60  ;;  %v4193_v1 = vcombine.low %v2037_v63, %v2041_v0  ;;  %v2062_v30 = vld [vmem:[#allocation9 + $0x208] sm:$0xff] }
  0x56   : > { %1524 = vmatprep.mubr.bf16.mxu1 %v4563_v3  ;;  %v4501_v20 = vld [vmem:[#allocation11 + $0x68] sm:$0xff]   ;;  %3578 = vmatpush1.bf16.msra.mxu0 %v4161_v34  ;;  %v4194_v5 = vcombine.high %v2037_v63, %v2041_v0  ;;  %v4195_v9 = vcombine.low %v2038_v6, %v2042_v8  ;;  %v4196_v10 = vcombine.high %v2038_v6, %v2042_v8  ;;  %v2061_v26 = vld [vmem:[#allocation9 + $0x200] sm:$0xff] }
  0x57   : > { %v4502_v21 = vld [vmem:[#allocation11 + $0x70] sm:$0xff]   ;;  %3579 = vmatprep.subr.bf16.mxu0 %v4170_v42  ;;  %v2065_v27 = vld [vmem:[#allocation9 + $0x220] sm:$0xff]  ;;  %v2066_v32 = vld [vmem:[#allocation9 + $0x228] sm:$0xff] }
  0x58   : > { %v4217_v28 = vcombine.low %v2061_v26, %v2065_v27  ;;  %v4218_v29 = vcombine.high %v2061_v26, %v2065_v27  ;;  %v4219_v33 = vcombine.low %v2062_v30, %v2066_v32  ;;  %v4220_v34 = vcombine.high %v2062_v30, %v2066_v32  ;;  %v2069_v35 = vld [vmem:[#allocation9 + $0x240] sm:$0xff]  ;;  %v2070_v39 = vld [vmem:[#allocation9 + $0x248] sm:$0xff] }
  0x59   : > { %v4503_v22 = vld [vmem:[#allocation11 + $0x78] sm:$0xff]   ;;  %v2074_v40 = vld [vmem:[#allocation9 + $0x268] sm:$0xff]  ;;  %v2077_v43 = vld [vmem:[#allocation9 + $0x280] sm:$0xff] }
  0x5a   : > { %3580 = vmatpush1.bf16.msra.mxu0 %v4169_v41  ;;  %v4227_v41 = vcombine.low %v2070_v39, %v2074_v40  ;;  %v4228_v42 = vcombine.high %v2070_v39, %v2074_v40  ;;  %v2081_v44 = vld [vmem:[#allocation9 + $0x2a0] sm:$0xff] }
  0x5b   : > { %3581 = vmatprep.subr.bf16.mxu0 %v4178_v50  ;;  %v4233_v47 = vcombine.low %v2077_v43, %v2081_v44  ;;  %v4234_v48 = vcombine.high %v2077_v43, %v2081_v44  ;;  %v2078_v44 = vld [vmem:[#allocation9 + $0x288] sm:$0xff] }
  0x5c   : > { %4124 = vmatmul.mubr.msk.bf16.gmra.mrb[12].mxu0 %vm1220_vm1, %v4491_v7 }
  0x5d   : > { %4140 = vmatmul.mubr.msk.bf16.gmra.mrb[12].mxu1 %vm1220_vm1, %v4491_v7  ;;  %1341 = vmatprep.mubr.bf16.mxu0 %v4563_v3  ;;  %v2045_v7 = vld [vmem:[#allocation9 + $0x180] sm:$0xff] }
  0x5e   : > { %1534 = vmatprep.mubr.bf16.mxu1 %v4563_v3  ;;  %3582 = vmatpush1.bf16.msra.mxu0 %v4177_v49  ;;  %v1078_v49 = vld [vmem:[%s5211_s1] sm:$0xf] }
  0x5f   : > { %3583 = vmatprep.subr.bf16.mxu0 %v4186_v58 }
  0x62   : > { %3584 = vmatpush1.bf16.msra.mxu0 %v4185_v57 }
  0x63   : > { %3585 = vmatprep.subr.bf16.mxu0 %v4194_v5 }
  0x64   : > { %4125 = vmatmul.mubr.msk.bf16.gmra.mrb[16].mxu0 %vm1220_vm1, %v4492_v11 }
  0x65   : > { %4141 = vmatmul.mubr.msk.bf16.gmra.mrb[16].mxu1 %vm1220_vm1, %v4492_v11  ;;  %1351 = vmatprep.mubr.bf16.mxu0 %v4563_v3  ;;  %v2049_v11 = vld [vmem:[#allocation9 + $0x1a0] sm:$0xff] }
  0x66   : > { %1544 = vmatprep.mubr.bf16.mxu1 %v4563_v3  ;;  %3586 = vmatpush1.bf16.msra.mxu0 %v4193_v1 }
  0x6c   : > { %4126 = vmatmul.mubr.msk.bf16.gmra.mrb[20].mxu0 %vm1220_vm1, %v4493_v12 }
  0x6d   : > { %4142 = vmatmul.mubr.msk.bf16.gmra.mrb[20].mxu1 %vm1220_vm1, %v4493_v12  ;;  %1361 = vmatprep.mubr.bf16.mxu0 %v4563_v3  ;;  %v4201_v12 = vcombine.low %v2045_v7, %v2049_v11 }
  0x6e   : > { %1554 = vmatprep.mubr.bf16.mxu1 %v4563_v3 }
  0x74   : > { %4127 = vmatmul.mubr.msk.bf16.gmra.mrb[24].mxu0 %vm1220_vm1, %v4494_v13 }
  0x75   : > { %4143 = vmatmul.mubr.msk.bf16.gmra.mrb[24].mxu1 %vm1220_vm1, %v4494_v13  ;;  %1371 = vmatprep.mubr.bf16.mxu0 %v4563_v3  ;;  %v4202_v13 = vcombine.high %v2045_v7, %v2049_v11 }
  0x76   : > { %1564 = vmatprep.mubr.bf16.mxu1 %v4563_v3 }
  0x77   : > { %3587 = vmatprep.subr.bf16.mxu0 %v4202_v13 }
  0x78   : > { %3588 = vmatpush1.bf16.msra.mxu0 %v4201_v12 }
  0x7c   : > { %4128 = vmatmul.mubr.msk.bf16.gmra.mrb[28].mxu0 %vm1220_vm1, %v4495_v14 }
  0x7d   : > { %4144 = vmatmul.mubr.msk.bf16.gmra.mrb[28].mxu1 %vm1220_vm1, %v4495_v14  ;;  %1381 = vmatprep.mubr.bf16.mxu0 %v4563_v3  ;;  %v2046_v14 = vld [vmem:[#allocation9 + $0x188] sm:$0xff] }
  0x7e   : > { %1574 = vmatprep.mubr.bf16.mxu1 %v4563_v3 }
  0x84   : > { %4129 = vmatmul.mubr.msk.bf16.gmra.mrb[32].mxu0 %vm1220_vm1, %v4496_v15 }
  0x85   : > { %4145 = vmatmul.mubr.msk.bf16.gmra.mrb[32].mxu1 %vm1220_vm1, %v4496_v15  ;;  %1391 = vmatprep.mubr.bf16.mxu0 %v4563_v3  ;;  %v2050_v15 = vld [vmem:[#allocation9 + $0x1a8] sm:$0xff] }
  0x86   : > { %1584 = vmatprep.mubr.bf16.mxu1 %v4563_v3 }
  0x8c   : > { %4130 = vmatmul.mubr.msk.bf16.gmra.mrb[36].mxu0 %vm1220_vm1, %v4497_v16 }
  0x8d   : > { %4146 = vmatmul.mubr.msk.bf16.gmra.mrb[36].mxu1 %vm1220_vm1, %v4497_v16  ;;  %1401 = vmatprep.mubr.bf16.mxu0 %v4563_v3  ;;  %v4203_v16 = vcombine.low %v2046_v14, %v2050_v15 }
  0x8e   : > { %1594 = vmatprep.mubr.bf16.mxu1 %v4563_v3 }
  0x94   : > { %4131 = vmatmul.mubr.msk.bf16.gmra.mrb[40].mxu0 %vm1220_vm1, %v4498_v17 }
  0x95   : > { %4147 = vmatmul.mubr.msk.bf16.gmra.mrb[40].mxu1 %vm1220_vm1, %v4498_v17  ;;  %1411 = vmatprep.mubr.bf16.mxu0 %v4563_v3  ;;  %v4204_v17 = vcombine.high %v2046_v14, %v2050_v15 }
  0x96   : > { %1604 = vmatprep.mubr.bf16.mxu1 %v4563_v3 }
  0x9c   : > { %4132 = vmatmul.mubr.msk.bf16.gmra.mrb[44].mxu0 %vm1220_vm1, %v4499_v18 }
  0x9d   : > { %4148 = vmatmul.mubr.msk.bf16.gmra.mrb[44].mxu1 %vm1220_vm1, %v4499_v18  ;;  %1421 = vmatprep.mubr.bf16.mxu0 %v4563_v3  ;;  %v2053_v18 = vld [vmem:[#allocation9 + $0x1c0] sm:$0xff] }
  0x9e   : > { %1614 = vmatprep.mubr.bf16.mxu1 %v4563_v3 }
  0xa4   : > { %4133 = vmatmul.mubr.msk.bf16.gmra.mrb[48].mxu0 %vm1220_vm1, %v4500_v19 }
  0xa5   : > { %4149 = vmatmul.mubr.msk.bf16.gmra.mrb[48].mxu1 %vm1220_vm1, %v4500_v19  ;;  %1431 = vmatprep.mubr.bf16.mxu0 %v4563_v3  ;;  %v2057_v19 = vld [vmem:[#allocation9 + $0x1e0] sm:$0xff] }
  0xa6   : > { %1624 = vmatprep.mubr.bf16.mxu1 %v4563_v3 }
  0xac   : > { %4134 = vmatmul.mubr.msk.bf16.gmra.mrb[52].mxu0 %vm1220_vm1, %v4501_v20 }
  0xad   : > { %4150 = vmatmul.mubr.msk.bf16.gmra.mrb[52].mxu1 %vm1220_vm1, %v4501_v20  ;;  %1441 = vmatprep.mubr.bf16.mxu0 %v4563_v3  ;;  %v4209_v20 = vcombine.low %v2053_v18, %v2057_v19 }
  0xae   : > { %1634 = vmatprep.mubr.bf16.mxu1 %v4563_v3 }
  0xb4   : > { %4135 = vmatmul.mubr.msk.bf16.gmra.mrb[56].mxu0 %vm1220_vm1, %v4502_v21 }
  0xb5   : > { %4151 = vmatmul.mubr.msk.bf16.gmra.mrb[56].mxu1 %vm1220_vm1, %v4502_v21  ;;  %1451 = vmatprep.mubr.bf16.mxu0 %v4563_v3  ;;  %v4210_v21 = vcombine.high %v2053_v18, %v2057_v19 }
  0xb6   : > { %1644 = vmatprep.mubr.bf16.mxu1 %v4563_v3  ;;  %v2006_v3 = vld [vmem:[#allocation9 + $0x48] sm:$0xff] }
  0xb7   : > { %v4163_v37 = vcombine.low %v2006_v3, %v2010_v36  ;;  %v4164_v38 = vcombine.high %v2006_v3, %v2010_v36  ;;  %3589 = vmatprep.subr.bf16.mxu0 %v4210_v21  ;;  %v2073_v3 = vld [vmem:[#allocation9 + $0x260] sm:$0xff] }
  0xb8   : > { %3590 = vmatpush1.bf16.msra.mxu0 %v4209_v20  ;;  %v4225_v36 = vcombine.low %v2069_v35, %v2073_v3 }
  0xb9   : > { %3659 = vmatprep.subr.bf16.mxu1 %v4164_v38  ;;  %3591 = vmatprep.subr.bf16.mxu0 %v4218_v29  ;;  %v4925_v38 = vshrl.u32 %v338_v4, 7 }
  0xba   : > { %3660 = vmatpush1.bf16.msra.mxu1 %v4163_v37  ;;  %v4226_v37 = vcombine.high %v2069_v35, %v2073_v3 }
  0xbb   : > { %3661 = vmatprep.subr.bf16.mxu1 %v4172_v46  ;;  %v4931_v46 = vsub.s32 2, %v4925_v38  ;;  %v4937_v50 = vsub.s32 1, %v4925_v38  ;;  %v4940_v51 = vsub.s32 3, %v4925_v38 }
  0xbc   : > { %4136 = vmatmul.mubr.msk.bf16.gmra.mrb[60].mxu0 %vm1220_vm1, %v4503_v22 }
  0xbd   : > { %4152 = vmatmul.mubr.msk.bf16.gmra.mrb[60].mxu1 %vm1220_vm1, %v4503_v22  ;;  %v2054_v22 = vld [vmem:[#allocation9 + $0x1c8] sm:$0xff]  ;;  %3592 = vmatpush1.bf16.msra.mxu0 %v4217_v28  ;;  %v4952_v55 = vrot.slane %v1078_v49, %v4940_v51 }
  0xbe   : > { %3662 = vmatpush1.bf16.msra.mxu1 %v4171_v45  ;;  %v4211_v24 = vcombine.low %v2054_v22, %v2058_v23  ;;  %v4212_v25 = vcombine.high %v2054_v22, %v2058_v23  ;;  %3593 = vmatprep.subr.bf16.mxu0 %v4226_v37  ;;  %v4928_v45 = vsub.s32 0, %v4925_v38 }
  0xbf   : > { %3663 = vmatprep.subr.bf16.mxu1 %v4180_v54  ;;  %v4949_v54 = vrot.slane %v1078_v49, %v4937_v50 }
  0xc0   : > { %v4943_v52 = vrot.slane %v1078_v49, %v4928_v45 }
  0xc1   : > { %3594 = vmatpush1.bf16.msra.mxu0 %v4225_v36 }
  0xc2   : > { %3664 = vmatpush1.bf16.msra.mxu1 %v4179_v53  ;;  %3595 = vmatprep.subr.bf16.mxu0 %v4234_v48  ;;  %v4946_v53 = vrot.slane %v1078_v49, %v4931_v46 }
  0xc3   : > { %3665 = vmatprep.subr.bf16.mxu1 %v4188_v62 }
  0xc5   : > { %3596 = vmatpush1.bf16.msra.mxu0 %v4233_v47  ;;  %v2082_v47 = vld [vmem:[#allocation9 + $0x2a8] sm:$0xff] }
  0xc6   : > { %3666 = vmatpush1.bf16.msra.mxu1 %v4187_v61 }
  0xc7   : > { %3667 = vmatprep.subr.bf16.mxu1 %v4196_v10 }
  0xca   : > { %3668 = vmatpush1.bf16.msra.mxu1 %v4195_v9 }
  0xcb   : > { %3669 = vmatprep.subr.bf16.mxu1 %v4204_v17 }
  0xce   : > { %3670 = vmatpush1.bf16.msra.mxu1 %v4203_v16 }
  0xcf   : > { %3671 = vmatprep.subr.bf16.mxu1 %v4212_v25 }
  0xd2   : > { %3672 = vmatpush1.bf16.msra.mxu1 %v4211_v24 }
  0xd3   : > { %3673 = vmatprep.subr.bf16.mxu1 %v4220_v34 }
  0xd6   : > { %3674 = vmatpush1.bf16.msra.mxu1 %v4219_v33 }
  0xd7   : > { %3675 = vmatprep.subr.bf16.mxu1 %v4228_v42 }
  0xda   : > { %3676 = vmatpush1.bf16.msra.mxu1 %v4227_v41 }
 0x117   : > { %v1303_v56 = vpop.f32.mrb[0].mxu0  ;;  %v1496_v57 = vpop.f32.mrb[0].mxu1 }
 0x118   : > { %v1304_v58 = vadd.f32 %v1303_v56, %v4943_v52  ;;  %v1497_v59 = vadd.f32 %v1496_v57, %v4946_v53  ;;  %v1305_v60 = vpop.f32.mrb[1].mxu0  ;;  %v1498_v61 = vpop.f32.mrb[1].mxu1 }
 0x119   : > { %v1306_v62 = vadd.f32 %v1305_v60, %v4949_v54  ;;  %v1499_v63 = vadd.f32 %v1498_v61, %v4952_v55  ;;  %v1307_v0 = vpop.f32.mrb[2].mxu0  ;;  %v1500_v1 = vpop.f32.mrb[2].mxu1 }
 0x11a   : > { %v1308_v5 = vadd.f32 %v1307_v0, %v4943_v52  ;;  %v1501_v6 = vadd.f32 %v1500_v1, %v4946_v53  ;;  %v1309_v8 = vpop.f32.mrb[3].mxu0  ;;  %v1502_v9 = vpop.f32.mrb[3].mxu1  ;;  %v1655_v11 = vmax.f32 %v1304_v58, 0.0  ;;  %v1657_v12 = vmax.f32 %v1497_v59, 0.0 }
 0x11b   : > { %v1310_v10 = vadd.f32 %v1309_v8, %v4949_v54  ;;  %v1503_v7 = vadd.f32 %v1502_v9, %v4952_v55  ;;  %v1656_v15 = vmax.f32 %v1306_v62, 0.0  ;;  %v1658_v16 = vmax.f32 %v1499_v63, 0.0  ;;  %v4970_v8 = vld [vmem:[#allocation9 + $0x2c8] sm:$0xff] }
 0x11c   : > { %v1659_v13 = vmax.f32 %v1308_v5, 0.0  ;;  %v1661_v14 = vmax.f32 %v1501_v6, 0.0  ;;  %v4235_v0 = vcombine.low %v2078_v44, %v2082_v47  ;;  %v4236_v1 = vcombine.high %v2078_v44, %v2082_v47  ;;  %v2085_v5 = vld [vmem:[#allocation9 + $0x2c0] sm:$0xff] }
 0x11d   : > { %v1660_v17 = vmax.f32 %v1310_v10, 0.0  ;;  %v1662_v18 = vmax.f32 %v1503_v7, 0.0  ;;  %v2089_v6 = vld [vmem:[#allocation9 + $0x2e0] sm:$0xff] }
 0x11e   : > { %v1784_v19 = vadd.f32 %v1659_v13, %v1655_v11  ;;  %v1858_v20 = vadd.f32 %v1661_v14, %v1657_v12  ;;  %v2090_v13 = vld [vmem:[#allocation9 + $0x2e8] sm:$0xff]  ;;  %3677 = vmatprep.subr.bf16.mxu1 %v4236_v1 }
 0x11f   : > { %v1821_v21 = vadd.f32 %v1660_v17, %v1656_v15  ;;  %v1895_v22 = vadd.f32 %v1662_v18, %v1658_v16  ;;  %v1313_v23 = vpop.f32.mrb[4].mxu0  ;;  %v4241_v18 = vcombine.low %v2085_v5, %v2089_v6  ;;  %3678 = vmatpush1.bf16.msra.mxu1 %v4235_v0 }
 0x120   : > { %v1506_v24 = vpop.f32.mrb[4].mxu1  ;;  %v1314_v25 = vadd.f32 %v1313_v23, %v4943_v52  ;;  %v1315_v27 = vpop.f32.mrb[5].mxu0  ;;  %v4243_v23 = vcombine.low %v4970_v8, %v2090_v13 }
 0x121   : > { %v1507_v26 = vadd.f32 %v1506_v24, %v4946_v53  ;;  %v1508_v28 = vpop.f32.mrb[5].mxu1  ;;  %v1316_v29 = vadd.f32 %v1315_v27, %v4949_v54  ;;  %v1317_v32 = vpop.f32.mrb[6].mxu0 }
 0x122   : > { %v1509_v30 = vadd.f32 %v1508_v28, %v4952_v55  ;;  %v1510_v33 = vpop.f32.mrb[6].mxu1  ;;  %v1663_v34 = vmax.f32 %v1314_v25, 0.0  ;;  %v1318_v3 = vadd.f32 %v1317_v32, %v4943_v52  ;;  %v1319_v37 = vpop.f32.mrb[7].mxu0 }
 0x123   : > { %v1665_v35 = vmax.f32 %v1507_v26, 0.0  ;;  %v1511_v36 = vadd.f32 %v1510_v33, %v4946_v53  ;;  %v1512_v39 = vpop.f32.mrb[7].mxu1  ;;  %v1664_v40 = vmax.f32 %v1316_v29, 0.0  ;;  %v1320_v42 = vadd.f32 %v1319_v37, %v4949_v54 }
 0x124   : > { %v1666_v41 = vmax.f32 %v1509_v30, 0.0  ;;  %v1513_v43 = vadd.f32 %v1512_v39, %v4952_v55  ;;  %v1785_v48 = vadd.f32 %v1784_v19, %v1663_v34  ;;  %v1667_v56 = vmax.f32 %v1318_v3, 0.0  ;;  %v2093_v34 = vld [vmem:[#allocation9 + $0x300] sm:$0xff] }
 0x125   : > { %v1859_v49 = vadd.f32 %v1858_v20, %v1665_v35  ;;  %v1669_v57 = vmax.f32 %v1511_v36, 0.0  ;;  %v1822_v58 = vadd.f32 %v1821_v21, %v1664_v40  ;;  %v1668_v60 = vmax.f32 %v1320_v42, 0.0  ;;  %v2097_v35 = vld [vmem:[#allocation9 + $0x320] sm:$0xff]  ;;  %v2094_v40 = vld [vmem:[#allocation9 + $0x308] sm:$0xff] }
 0x126   : > { %v1896_v59 = vadd.f32 %v1895_v22, %v1666_v41  ;;  %v1670_v61 = vmax.f32 %v1513_v43, 0.0  ;;  %v1786_v62 = vadd.f32 %v1785_v48, %v1667_v56  ;;  %v4242_v19 = vcombine.high %v2085_v5, %v2089_v6  ;;  %v2098_v41 = vld [vmem:[#allocation9 + $0x328] sm:$0xff] }
 0x127   : > { %v1860_v63 = vadd.f32 %v1859_v49, %v1669_v57  ;;  %v1823_v9 = vadd.f32 %v1822_v58, %v1668_v60  ;;  %v1323_v7 = vpop.f32.mrb[8].mxu0  ;;  %v4244_v56 = vcombine.high %v4970_v8, %v2090_v13  ;;  %v4249_v57 = vcombine.low %v2093_v34, %v2097_v35  ;;  %v2101_v58 = vld [vmem:[#allocation9 + $0x340] sm:$0xff] }
 0x128   : > { %v1897_v10 = vadd.f32 %v1896_v59, %v1670_v61  ;;  %v1516_v11 = vpop.f32.mrb[8].mxu1  ;;  %v1324_v14 = vadd.f32 %v1323_v7, %v4943_v52  ;;  %v1325_v16 = vpop.f32.mrb[9].mxu0  ;;  %3597 = vmatprep.subr.bf16.mxu0 %v4242_v19  ;;  %v2105_v59 = vld [vmem:[#allocation9 + $0x360] sm:$0xff]  ;;  %v4251_v1 = vcombine.low %v2094_v40, %v2098_v41  ;;  %v4252_v7 = vcombine.high %v2094_v40, %v2098_v41 }
 0x129   : > { %v1517_v15 = vadd.f32 %v1516_v11, %v4946_v53  ;;  %v1518_v17 = vpop.f32.mrb[9].mxu1  ;;  %v1326_v20 = vadd.f32 %v1325_v16, %v4949_v54  ;;  %v1327_v21 = vpop.f32.mrb[10].mxu0  ;;  %3598 = vmatpush1.bf16.msra.mxu0 %v4241_v18  ;;  %3679 = vmatprep.subr.bf16.mxu1 %v4244_v56  ;;  %v4257_v11 = vcombine.low %v2101_v58, %v2105_v59 }
 0x12a   : > { %v1519_v4 = vadd.f32 %v1518_v17, %v4952_v55  ;;  %v1520_v22 = vpop.f32.mrb[10].mxu1  ;;  %v1671_v24 = vmax.f32 %v1324_v14, 0.0  ;;  %v1328_v26 = vadd.f32 %v1327_v21, %v4943_v52  ;;  %v1329_v28 = vpop.f32.mrb[11].mxu0  ;;  %3680 = vmatpush1.bf16.msra.mxu1 %v4243_v23  ;;  %v4258_v16 = vcombine.high %v2101_v58, %v2105_v59  ;;  %v2102_v23 = vld [vmem:[#allocation9 + $0x348] sm:$0xff] }
 0x12b   : > { %v1673_v25 = vmax.f32 %v1517_v15, 0.0  ;;  %v1521_v27 = vadd.f32 %v1520_v22, %v4946_v53  ;;  %v1522_v29 = vpop.f32.mrb[11].mxu1  ;;  %v1672_v31 = vmax.f32 %v1326_v20, 0.0  ;;  %v1330_v32 = vadd.f32 %v1329_v28, %v4949_v54  ;;  %3681 = vmatprep.subr.bf16.mxu1 %v4252_v7 }
 0x12c   : > { %v1674_v30 = vmax.f32 %v1519_v4, 0.0  ;;  %v1523_v33 = vadd.f32 %v1522_v29, %v4952_v55  ;;  %v1787_v3 = vadd.f32 %v1786_v62, %v1671_v24  ;;  %v1675_v37 = vmax.f32 %v1328_v26, 0.0 }
 0x12d   : > { %v1861_v36 = vadd.f32 %v1860_v63, %v1673_v25  ;;  %v1677_v39 = vmax.f32 %v1521_v27, 0.0  ;;  %v1824_v42 = vadd.f32 %v1823_v9, %v1672_v31  ;;  %v1676_v44 = vmax.f32 %v1330_v32, 0.0  ;;  %v2106_v27 = vld [vmem:[#allocation9 + $0x368] sm:$0xff]  ;;  %v2109_v32 = vld [vmem:[#allocation9 + $0x380] sm:$0xff] }
 0x12e   : > { %v1898_v43 = vadd.f32 %v1897_v10, %v1674_v30  ;;  %v1678_v47 = vmax.f32 %v1523_v33, 0.0  ;;  %v1788_v48 = vadd.f32 %v1787_v3, %v1675_v37  ;;  %v4250_v63 = vcombine.high %v2093_v34, %v2097_v35  ;;  %v2113_v33 = vld [vmem:[#allocation9 + $0x3a0] sm:$0xff]  ;;  %3682 = vmatpush1.bf16.msra.mxu1 %v4251_v1  ;;  %v2110_v37 = vld [vmem:[#allocation9 + $0x388] sm:$0xff] }
 0x12f   : > { %v1862_v49 = vadd.f32 %v1861_v36, %v1677_v39  ;;  %v1825_v60 = vadd.f32 %v1824_v42, %v1676_v44  ;;  %v1333_v0 = vpop.f32.mrb[12].mxu0  ;;  %v2114_v39 = vld [vmem:[#allocation9 + $0x3a8] sm:$0xff]  ;;  %v4259_v42 = vcombine.low %v2102_v23, %v2106_v27  ;;  %v4998_v44 = vld [vmem:[#allocation9 + $0x3c0] sm:$0xff]  ;;  %v4265_v58 = vcombine.low %v2109_v32, %v2113_v33 }
 0x130   : > { %v1899_v61 = vadd.f32 %v1898_v43, %v1678_v47  ;;  %v1526_v62 = vpop.f32.mrb[12].mxu1  ;;  %v1334_v5 = vadd.f32 %v1333_v0, %v4943_v52  ;;  %v1335_v9 = vpop.f32.mrb[13].mxu0  ;;  %3599 = vmatprep.subr.bf16.mxu0 %v4250_v63  ;;  %v4260_v43 = vcombine.high %v2102_v23, %v2106_v27  ;;  %v5000_v47 = vld [vmem:[#allocation9 + $0x3e0] sm:$0xff]  ;;  %v4266_v59 = vcombine.high %v2109_v32, %v2113_v33  ;;  %v5016_v32 = vld [vmem:[#allocation9 + $0x408] sm:$0xff] }
 0x131   : > { %v1527_v6 = vadd.f32 %v1526_v62, %v4946_v53  ;;  %v1528_v10 = vpop.f32.mrb[13].mxu1  ;;  %v1336_v8 = vadd.f32 %v1335_v9, %v4949_v54  ;;  %v1337_v14 = vpop.f32.mrb[14].mxu0  ;;  %3600 = vmatpush1.bf16.msra.mxu0 %v4249_v57  ;;  %v4267_v63 = vcombine.low %v2110_v37, %v2114_v39  ;;  %v4268_v1 = vcombine.high %v2110_v37, %v2114_v39  ;;  %v5012_v23 = vld [vmem:[#allocation9 + $0x400] sm:$0xff]  ;;  %v5018_v33 = vld [vmem:[#allocation9 + $0x428] sm:$0xff] }
 0x132   : > { %v1529_v13 = vadd.f32 %v1528_v10, %v4952_v55  ;;  %v1530_v15 = vpop.f32.mrb[14].mxu1  ;;  %v1679_v17 = vmax.f32 %v1334_v5, 0.0  ;;  %v1338_v19 = vadd.f32 %v1337_v14, %v4943_v52  ;;  %v1339_v4 = vpop.f32.mrb[15].mxu0  ;;  %3601 = vmatprep.subr.bf16.mxu0 %v4258_v16  ;;  %3683 = vmatprep.subr.bf16.mxu1 %v4260_v43  ;;  %v4273_v7 = vcombine.low %v4998_v44, %v5000_v47  ;;  %v5014_v27 = vld [vmem:[#allocation9 + $0x420] sm:$0xff] }
 0x133   : > { %v1681_v18 = vmax.f32 %v1527_v6, 0.0  ;;  %v1531_v20 = vadd.f32 %v1530_v15, %v4946_v53  ;;  %v1532_v21 = vpop.f32.mrb[15].mxu1  ;;  %v1680_v22 = vmax.f32 %v1336_v8, 0.0  ;;  %v1340_v25 = vadd.f32 %v1339_v4, %v4949_v54  ;;  %3684 = vmatpush1.bf16.msra.mxu1 %v4259_v42  ;;  %v2118_v4 = vld [vmem:[#allocation9 + $0x3c8] sm:$0xff] }
 0x134   : > { %v1682_v24 = vmax.f32 %v1529_v13, 0.0  ;;  %v1533_v26 = vadd.f32 %v1532_v21, %v4952_v55  ;;  %v1789_v28 = vadd.f32 %v1788_v48, %v1679_v17  ;;  %v1683_v31 = vmax.f32 %v1338_v19, 0.0  ;;  %3685 = vmatprep.subr.bf16.mxu1 %v4268_v1  ;;  %v2122_v21 = vld [vmem:[#allocation9 + $0x3e8] sm:$0xff] }
 0x135   : > { %v1863_v29 = vadd.f32 %v1862_v49, %v1681_v18  ;;  %v1685_v30 = vmax.f32 %v1531_v20, 0.0  ;;  %v1826_v34 = vadd.f32 %v1825_v60, %v1680_v22  ;;  %v1684_v3 = vmax.f32 %v1340_v25, 0.0  ;;  %3602 = vmatpush1.bf16.msra.mxu0 %v4257_v11 }
 0x136   : > { %v1900_v35 = vadd.f32 %v1899_v61, %v1682_v24  ;;  %v1686_v36 = vmax.f32 %v1533_v26, 0.0  ;;  %v1790_v40 = vadd.f32 %v1789_v28, %v1683_v31  ;;  %3603 = vmatprep.subr.bf16.mxu0 %v4266_v59  ;;  %v4276_v42 = vcombine.high %v2118_v4, %v2122_v21 }
 0x137   : > { %v1864_v41 = vadd.f32 %v1863_v29, %v1685_v30  ;;  %v1827_v48 = vadd.f32 %v1826_v34, %v1684_v3  ;;  %v1343_v56 = vpop.f32.mrb[16].mxu0  ;;  %3686 = vmatpush1.bf16.msra.mxu1 %v4267_v63  ;;  %v4274_v3 = vcombine.high %v4998_v44, %v5000_v47  ;;  %v4281_v43 = vcombine.low %v5012_v23, %v5014_v27 }
 0x138   : > { %v1901_v49 = vadd.f32 %v1900_v35, %v1686_v36  ;;  %v1536_v57 = vpop.f32.mrb[16].mxu1  ;;  %v1344_v60 = vadd.f32 %v1343_v56, %v4943_v52  ;;  %v1345_v0 = vpop.f32.mrb[17].mxu0  ;;  %v4275_v36 = vcombine.low %v2118_v4, %v2122_v21  ;;  %v4283_v44 = vcombine.low %v5016_v32, %v5018_v33  ;;  %3687 = vmatprep.subr.bf16.mxu1 %v4276_v42 }
 0x139   : > { %v1537_v61 = vadd.f32 %v1536_v57, %v4946_v53  ;;  %v1538_v62 = vpop.f32.mrb[17].mxu1  ;;  %v1346_v5 = vadd.f32 %v1345_v0, %v4949_v54  ;;  %v1347_v9 = vpop.f32.mrb[18].mxu0  ;;  %3604 = vmatpush1.bf16.msra.mxu0 %v4265_v58  ;;  %v4282_v58 = vcombine.high %v5012_v23, %v5014_v27  ;;  %v4284_v0 = vcombine.high %v5016_v32, %v5018_v33 }
 0x13a   : > { %v1539_v6 = vadd.f32 %v1538_v62, %v4952_v55  ;;  %v1540_v10 = vpop.f32.mrb[18].mxu1  ;;  %v1687_v11 = vmax.f32 %v1344_v60, 0.0  ;;  %v1348_v13 = vadd.f32 %v1347_v9, %v4943_v52  ;;  %v1349_v15 = vpop.f32.mrb[19].mxu0  ;;  %3605 = vmatprep.subr.bf16.mxu0 %v4274_v3 }
 0x13b   : > { %v1689_v8 = vmax.f32 %v1537_v61, 0.0  ;;  %v1541_v14 = vadd.f32 %v1540_v10, %v4946_v53  ;;  %v1542_v16 = vpop.f32.mrb[19].mxu1  ;;  %v1688_v17 = vmax.f32 %v1346_v5, 0.0  ;;  %v1350_v19 = vadd.f32 %v1349_v15, %v4949_v54  ;;  %3688 = vmatpush1.bf16.msra.mxu1 %v4275_v36 }
 0x13c   : > { %v1690_v18 = vmax.f32 %v1539_v6, 0.0  ;;  %v1543_v20 = vadd.f32 %v1542_v16, %v4952_v55  ;;  %v1791_v22 = vadd.f32 %v1790_v40, %v1687_v11  ;;  %v1691_v25 = vmax.f32 %v1348_v13, 0.0  ;;  %3698 = vmatprep.subr.bf16.mxu1 %v4284_v0 }
 0x13d   : > { %v1865_v24 = vadd.f32 %v1864_v41, %v1689_v8  ;;  %v1693_v26 = vmax.f32 %v1541_v14, 0.0  ;;  %v1828_v28 = vadd.f32 %v1827_v48, %v1688_v17  ;;  %v1692_v31 = vmax.f32 %v1350_v19, 0.0  ;;  %3606 = vmatpush1.bf16.msra.mxu0 %v4273_v7 }
 0x13e   : > { %v1902_v29 = vadd.f32 %v1901_v49, %v1690_v18  ;;  %v1694_v30 = vmax.f32 %v1543_v20, 0.0  ;;  %v1792_v34 = vadd.f32 %v1791_v22, %v1691_v25  ;;  %3616 = vmatprep.subr.bf16.mxu0 %v4282_v58 }
 0x13f   : > { %v1866_v35 = vadd.f32 %v1865_v24, %v1693_v26  ;;  %v1829_v37 = vadd.f32 %v1828_v28, %v1692_v31  ;;  %v1353_v40 = vpop.f32.mrb[20].mxu0 }
 0x140   : > { %v1903_v39 = vadd.f32 %v1902_v29, %v1694_v30  ;;  %v1546_v41 = vpop.f32.mrb[20].mxu1  ;;  %v1354_v48 = vadd.f32 %v1353_v40, %v4943_v52  ;;  %v1355_v56 = vpop.f32.mrb[21].mxu0 }
 0x141   : > { %v1547_v49 = vadd.f32 %v1546_v41, %v4946_v53  ;;  %v1548_v57 = vpop.f32.mrb[21].mxu1  ;;  %v1356_v47 = vadd.f32 %v1355_v56, %v4949_v54  ;;  %v1357_v60 = vpop.f32.mrb[22].mxu0 }
 0x142   : > { %v1549_v59 = vadd.f32 %v1548_v57, %v4952_v55  ;;  %v1550_v61 = vpop.f32.mrb[22].mxu1  ;;  %v1695_v62 = vmax.f32 %v1354_v48, 0.0  ;;  %v1358_v1 = vadd.f32 %v1357_v60, %v4943_v52  ;;  %v1359_v6 = vpop.f32.mrb[23].mxu0 }
 0x143   : > { %v1697_v63 = vmax.f32 %v1547_v49, 0.0  ;;  %v1551_v5 = vadd.f32 %v1550_v61, %v4946_v53  ;;  %v1552_v9 = vpop.f32.mrb[23].mxu1  ;;  %v1696_v10 = vmax.f32 %v1356_v47, 0.0  ;;  %v1360_v8 = vadd.f32 %v1359_v6, %v4949_v54 }
 0x144   : > { %v1698_v11 = vmax.f32 %v1549_v59, 0.0  ;;  %v1553_v7 = vadd.f32 %v1552_v9, %v4952_v55  ;;  %v1793_v13 = vadd.f32 %v1792_v34, %v1695_v62  ;;  %v1699_v15 = vmax.f32 %v1358_v1, 0.0 }
 0x145   : > { %v1867_v14 = vadd.f32 %v1866_v35, %v1697_v63  ;;  %v1701_v16 = vmax.f32 %v1551_v5, 0.0  ;;  %v1830_v17 = vadd.f32 %v1829_v37, %v1696_v10  ;;  %v1700_v19 = vmax.f32 %v1360_v8, 0.0 }
 0x146   : > { %v1904_v18 = vadd.f32 %v1903_v39, %v1698_v11  ;;  %v1702_v20 = vmax.f32 %v1553_v7, 0.0  ;;  %v1794_v4 = vadd.f32 %v1793_v13, %v1699_v15 }
 0x147   : > { %v1868_v21 = vadd.f32 %v1867_v14, %v1701_v16  ;;  %v1831_v22 = vadd.f32 %v1830_v17, %v1700_v19  ;;  %v1363_v25 = vpop.f32.mrb[24].mxu0 }
 0x148   : > { %v1905_v24 = vadd.f32 %v1904_v18, %v1702_v20  ;;  %v1556_v26 = vpop.f32.mrb[24].mxu1  ;;  %v1364_v28 = vadd.f32 %v1363_v25, %v4943_v52  ;;  %v1365_v31 = vpop.f32.mrb[25].mxu0 }
 0x149   : > { %v1557_v29 = vadd.f32 %v1556_v26, %v4946_v53  ;;  %v1558_v30 = vpop.f32.mrb[25].mxu1  ;;  %v1366_v34 = vadd.f32 %v1365_v31, %v4949_v54  ;;  %v1367_v3 = vpop.f32.mrb[26].mxu0 }
 0x14a   : > { %v1559_v35 = vadd.f32 %v1558_v30, %v4952_v55  ;;  %v1560_v36 = vpop.f32.mrb[26].mxu1  ;;  %v1703_v37 = vmax.f32 %v1364_v28, 0.0  ;;  %v1368_v40 = vadd.f32 %v1367_v3, %v4943_v52  ;;  %v1369_v42 = vpop.f32.mrb[27].mxu0 }
 0x14b   : > { %v1705_v39 = vmax.f32 %v1557_v29, 0.0  ;;  %v1561_v41 = vadd.f32 %v1560_v36, %v4946_v53  ;;  %v1562_v48 = vpop.f32.mrb[27].mxu1  ;;  %v1704_v49 = vmax.f32 %v1366_v34, 0.0  ;;  %v1370_v57 = vadd.f32 %v1369_v42, %v4949_v54 }
 0x14c   : > { %v1706_v56 = vmax.f32 %v1559_v35, 0.0  ;;  %v1563_v58 = vadd.f32 %v1562_v48, %v4952_v55  ;;  %v1795_v47 = vadd.f32 %v1794_v4, %v1703_v37  ;;  %v1707_v60 = vmax.f32 %v1368_v40, 0.0 }
 0x14d   : > { %v1869_v59 = vadd.f32 %v1868_v21, %v1705_v39  ;;  %v1709_v61 = vmax.f32 %v1561_v41, 0.0  ;;  %v1832_v0 = vadd.f32 %v1831_v22, %v1704_v49  ;;  %v1708_v63 = vmax.f32 %v1370_v57, 0.0 }
 0x14e   : > { %v1906_v62 = vadd.f32 %v1905_v24, %v1706_v56  ;;  %v1710_v1 = vmax.f32 %v1563_v58, 0.0  ;;  %v1796_v5 = vadd.f32 %v1795_v47, %v1707_v60 }
 0x14f   : > { %v1870_v6 = vadd.f32 %v1869_v59, %v1709_v61  ;;  %v1833_v9 = vadd.f32 %v1832_v0, %v1708_v63  ;;  %v1373_v11 = vpop.f32.mrb[28].mxu0 }
 0x150   : > { %v1907_v10 = vadd.f32 %v1906_v62, %v1710_v1  ;;  %v1566_v8 = vpop.f32.mrb[28].mxu1  ;;  %v1374_v7 = vadd.f32 %v1373_v11, %v4943_v52  ;;  %v1375_v14 = vpop.f32.mrb[29].mxu0 }
 0x151   : > { %v1567_v13 = vadd.f32 %v1566_v8, %v4946_v53  ;;  %v1568_v15 = vpop.f32.mrb[29].mxu1  ;;  %v1376_v16 = vadd.f32 %v1375_v14, %v4949_v54  ;;  %v1377_v18 = vpop.f32.mrb[30].mxu0 }
 0x152   : > { %v1569_v17 = vadd.f32 %v1568_v15, %v4952_v55  ;;  %v1570_v19 = vpop.f32.mrb[30].mxu1  ;;  %v1711_v20 = vmax.f32 %v1374_v7, 0.0  ;;  %v1378_v21 = vadd.f32 %v1377_v18, %v4943_v52  ;;  %v1379_v24 = vpop.f32.mrb[31].mxu0 }
 0x153   : > { %v1713_v4 = vmax.f32 %v1567_v13, 0.0  ;;  %v1571_v22 = vadd.f32 %v1570_v19, %v4946_v53  ;;  %v1572_v25 = vpop.f32.mrb[31].mxu1  ;;  %v1712_v26 = vmax.f32 %v1376_v16, 0.0  ;;  %v1380_v29 = vadd.f32 %v1379_v24, %v4949_v54 }
 0x154   : > { %v1714_v28 = vmax.f32 %v1569_v17, 0.0  ;;  %v1573_v31 = vadd.f32 %v1572_v25, %v4952_v55  ;;  %v1797_v30 = vadd.f32 %v1796_v5, %v1711_v20  ;;  %v1715_v35 = vmax.f32 %v1378_v21, 0.0 }
 0x155   : > { %v1871_v34 = vadd.f32 %v1870_v6, %v1713_v4  ;;  %v1717_v3 = vmax.f32 %v1571_v22, 0.0  ;;  %v1834_v36 = vadd.f32 %v1833_v9, %v1712_v26  ;;  %v1716_v39 = vmax.f32 %v1380_v29, 0.0 }
 0x156   : > { %v1908_v37 = vadd.f32 %v1907_v10, %v1714_v28  ;;  %v1718_v40 = vmax.f32 %v1573_v31, 0.0  ;;  %v1798_v41 = vadd.f32 %v1797_v30, %v1715_v35 }
 0x157   : > { %v1872_v42 = vadd.f32 %v1871_v34, %v1717_v3  ;;  %v1835_v48 = vadd.f32 %v1834_v36, %v1716_v39  ;;  %v1383_v56 = vpop.f32.mrb[32].mxu0 }
 0x158   : > { %v1909_v49 = vadd.f32 %v1908_v37, %v1718_v40  ;;  %v1576_v57 = vpop.f32.mrb[32].mxu1  ;;  %v1384_v58 = vadd.f32 %v1383_v56, %v4943_v52  ;;  %v1385_v59 = vpop.f32.mrb[33].mxu0 }
 0x159   : > { %v1577_v47 = vadd.f32 %v1576_v57, %v4946_v53  ;;  %v1578_v60 = vpop.f32.mrb[33].mxu1  ;;  %v1386_v61 = vadd.f32 %v1385_v59, %v4949_v54  ;;  %v1387_v62 = vpop.f32.mrb[34].mxu0 }
 0x15a   : > { %v1579_v0 = vadd.f32 %v1578_v60, %v4952_v55  ;;  %v1580_v63 = vpop.f32.mrb[34].mxu1  ;;  %v1719_v1 = vmax.f32 %v1384_v58, 0.0  ;;  %v1388_v6 = vadd.f32 %v1387_v62, %v4943_v52  ;;  %v1389_v10 = vpop.f32.mrb[35].mxu0 }
 0x15b   : > { %v1721_v5 = vmax.f32 %v1577_v47, 0.0  ;;  %v1581_v9 = vadd.f32 %v1580_v63, %v4946_v53  ;;  %v1582_v11 = vpop.f32.mrb[35].mxu1  ;;  %v1720_v8 = vmax.f32 %v1386_v61, 0.0  ;;  %v1390_v13 = vadd.f32 %v1389_v10, %v4949_v54 }
 0x15c   : > { %v1722_v7 = vmax.f32 %v1579_v0, 0.0  ;;  %v1583_v14 = vadd.f32 %v1582_v11, %v4952_v55  ;;  %v1799_v15 = vadd.f32 %v1798_v41, %v1719_v1  ;;  %v1723_v17 = vmax.f32 %v1388_v6, 0.0 }
 0x15d   : > { %v1873_v16 = vadd.f32 %v1872_v42, %v1721_v5  ;;  %v1725_v18 = vmax.f32 %v1581_v9, 0.0  ;;  %v1836_v19 = vadd.f32 %v1835_v48, %v1720_v8  ;;  %v1724_v4 = vmax.f32 %v1390_v13, 0.0 }
 0x15e   : > { %v1910_v20 = vadd.f32 %v1909_v49, %v1722_v7  ;;  %v1726_v21 = vmax.f32 %v1583_v14, 0.0  ;;  %v1800_v22 = vadd.f32 %v1799_v15, %v1723_v17 }
 0x15f   : > { %v1874_v24 = vadd.f32 %v1873_v16, %v1725_v18  ;;  %v1837_v25 = vadd.f32 %v1836_v19, %v1724_v4  ;;  %v1393_v28 = vpop.f32.mrb[36].mxu0 }
 0x160   : > { %v1911_v26 = vadd.f32 %v1910_v20, %v1726_v21  ;;  %v1586_v29 = vpop.f32.mrb[36].mxu1  ;;  %v1394_v31 = vadd.f32 %v1393_v28, %v4943_v52  ;;  %v1395_v34 = vpop.f32.mrb[37].mxu0 }
 0x161   : > { %v1587_v30 = vadd.f32 %v1586_v29, %v4946_v53  ;;  %v1588_v35 = vpop.f32.mrb[37].mxu1  ;;  %v1396_v3 = vadd.f32 %v1395_v34, %v4949_v54  ;;  %v1397_v37 = vpop.f32.mrb[38].mxu0 }
 0x162   : > { %v1589_v36 = vadd.f32 %v1588_v35, %v4952_v55  ;;  %v1590_v39 = vpop.f32.mrb[38].mxu1  ;;  %v1727_v40 = vmax.f32 %v1394_v31, 0.0  ;;  %v1398_v42 = vadd.f32 %v1397_v37, %v4943_v52  ;;  %v1399_v49 = vpop.f32.mrb[39].mxu0 }
 0x163   : > { %v1729_v41 = vmax.f32 %v1587_v30, 0.0  ;;  %v1591_v48 = vadd.f32 %v1590_v39, %v4946_v53  ;;  %v1592_v56 = vpop.f32.mrb[39].mxu1  ;;  %v1728_v57 = vmax.f32 %v1396_v3, 0.0  ;;  %v1400_v47 = vadd.f32 %v1399_v49, %v4949_v54 }
 0x164   : > { %v1730_v58 = vmax.f32 %v1589_v36, 0.0  ;;  %v1593_v59 = vadd.f32 %v1592_v56, %v4952_v55  ;;  %v1801_v60 = vadd.f32 %v1800_v22, %v1727_v40  ;;  %v1731_v0 = vmax.f32 %v1398_v42, 0.0 }
 0x165   : > { %v1875_v61 = vadd.f32 %v1874_v24, %v1729_v41  ;;  %v1733_v62 = vmax.f32 %v1591_v48, 0.0  ;;  %v1838_v63 = vadd.f32 %v1837_v25, %v1728_v57  ;;  %v1732_v5 = vmax.f32 %v1400_v47, 0.0 }
 0x166   : > { %v1912_v1 = vadd.f32 %v1911_v26, %v1730_v58  ;;  %v1734_v6 = vmax.f32 %v1593_v59, 0.0  ;;  %v1802_v9 = vadd.f32 %v1801_v60, %v1731_v0 }
 0x167   : > { %v1876_v10 = vadd.f32 %v1875_v61, %v1733_v62  ;;  %v1839_v11 = vadd.f32 %v1838_v63, %v1732_v5  ;;  %v1403_v7 = vpop.f32.mrb[40].mxu0 }
 0x168   : > { %v1913_v8 = vadd.f32 %v1912_v1, %v1734_v6  ;;  %v1596_v13 = vpop.f32.mrb[40].mxu1  ;;  %v1404_v14 = vadd.f32 %v1403_v7, %v4943_v52  ;;  %v1405_v16 = vpop.f32.mrb[41].mxu0 }
 0x169   : > { %v1597_v15 = vadd.f32 %v1596_v13, %v4946_v53  ;;  %v1598_v17 = vpop.f32.mrb[41].mxu1  ;;  %v1406_v18 = vadd.f32 %v1405_v16, %v4949_v54  ;;  %v1407_v20 = vpop.f32.mrb[42].mxu0 }
 0x16a   : > { %v1599_v19 = vadd.f32 %v1598_v17, %v4952_v55  ;;  %v1600_v4 = vpop.f32.mrb[42].mxu1  ;;  %v1735_v21 = vmax.f32 %v1404_v14, 0.0  ;;  %v1408_v24 = vadd.f32 %v1407_v20, %v4943_v52  ;;  %v1409_v26 = vpop.f32.mrb[43].mxu0 }
 0x16b   : > { %v1737_v22 = vmax.f32 %v1597_v15, 0.0  ;;  %v1601_v25 = vadd.f32 %v1600_v4, %v4946_v53  ;;  %v1602_v28 = vpop.f32.mrb[43].mxu1  ;;  %v1736_v29 = vmax.f32 %v1406_v18, 0.0  ;;  %v1410_v30 = vadd.f32 %v1409_v26, %v4949_v54 }
 0x16c   : > { %v1738_v31 = vmax.f32 %v1599_v19, 0.0  ;;  %v1603_v34 = vadd.f32 %v1602_v28, %v4952_v55  ;;  %v1803_v35 = vadd.f32 %v1802_v9, %v1735_v21  ;;  %v1739_v36 = vmax.f32 %v1408_v24, 0.0 }
 0x16d   : > { %v1877_v3 = vadd.f32 %v1876_v10, %v1737_v22  ;;  %v1741_v37 = vmax.f32 %v1601_v25, 0.0  ;;  %v1840_v39 = vadd.f32 %v1839_v11, %v1736_v29  ;;  %v1740_v41 = vmax.f32 %v1410_v30, 0.0 }
 0x16e   : > { %v1914_v40 = vadd.f32 %v1913_v8, %v1738_v31  ;;  %v1742_v42 = vmax.f32 %v1603_v34, 0.0  ;;  %v1804_v48 = vadd.f32 %v1803_v35, %v1739_v36 }
 0x16f   : > { %v1878_v49 = vadd.f32 %v1877_v3, %v1741_v37  ;;  %v1841_v56 = vadd.f32 %v1840_v39, %v1740_v41  ;;  %v1413_v58 = vpop.f32.mrb[44].mxu0 }
 0x170   : > { %v1915_v57 = vadd.f32 %v1914_v40, %v1742_v42  ;;  %v1606_v47 = vpop.f32.mrb[44].mxu1  ;;  %v1414_v59 = vadd.f32 %v1413_v58, %v4943_v52  ;;  %v1415_v61 = vpop.f32.mrb[45].mxu0 }
 0x171   : > { %v1607_v60 = vadd.f32 %v1606_v47, %v4946_v53  ;;  %v1608_v0 = vpop.f32.mrb[45].mxu1  ;;  %v1416_v62 = vadd.f32 %v1415_v61, %v4949_v54  ;;  %v1417_v1 = vpop.f32.mrb[46].mxu0 }
 0x172   : > { %v1609_v63 = vadd.f32 %v1608_v0, %v4952_v55  ;;  %v1610_v5 = vpop.f32.mrb[46].mxu1  ;;  %v1743_v6 = vmax.f32 %v1414_v59, 0.0  ;;  %v1418_v10 = vadd.f32 %v1417_v1, %v4943_v52  ;;  %v1419_v8 = vpop.f32.mrb[47].mxu0 }
 0x173   : > { %v1745_v9 = vmax.f32 %v1607_v60, 0.0  ;;  %v1611_v11 = vadd.f32 %v1610_v5, %v4946_v53  ;;  %v1612_v7 = vpop.f32.mrb[47].mxu1  ;;  %v1744_v13 = vmax.f32 %v1416_v62, 0.0  ;;  %v1420_v15 = vadd.f32 %v1419_v8, %v4949_v54 }
 0x174   : > { %v1746_v14 = vmax.f32 %v1609_v63, 0.0  ;;  %v1613_v16 = vadd.f32 %v1612_v7, %v4952_v55  ;;  %v1805_v17 = vadd.f32 %v1804_v48, %v1743_v6  ;;  %v1747_v19 = vmax.f32 %v1418_v10, 0.0 }
 0x175   : > { %v1879_v18 = vadd.f32 %v1878_v49, %v1745_v9  ;;  %v1749_v20 = vmax.f32 %v1611_v11, 0.0  ;;  %v1842_v4 = vadd.f32 %v1841_v56, %v1744_v13  ;;  %v1748_v22 = vmax.f32 %v1420_v15, 0.0 }
 0x176   : > { %v1916_v21 = vadd.f32 %v1915_v57, %v1746_v14  ;;  %v1750_v24 = vmax.f32 %v1613_v16, 0.0  ;;  %v1806_v25 = vadd.f32 %v1805_v17, %v1747_v19 }
 0x177   : > { %v1880_v26 = vadd.f32 %v1879_v18, %v1749_v20  ;;  %v1843_v28 = vadd.f32 %v1842_v4, %v1748_v22  ;;  %v1423_v31 = vpop.f32.mrb[48].mxu0 }
 0x178   : > { %v1917_v29 = vadd.f32 %v1916_v21, %v1750_v24  ;;  %v1616_v30 = vpop.f32.mrb[48].mxu1  ;;  %v1424_v34 = vadd.f32 %v1423_v31, %v4943_v52  ;;  %v1425_v3 = vpop.f32.mrb[49].mxu0 }
 0x179   : > { %v1617_v35 = vadd.f32 %v1616_v30, %v4946_v53  ;;  %v1618_v36 = vpop.f32.mrb[49].mxu1  ;;  %v1426_v37 = vadd.f32 %v1425_v3, %v4949_v54  ;;  %v1427_v40 = vpop.f32.mrb[50].mxu0 }
 0x17a   : > { %v1619_v39 = vadd.f32 %v1618_v36, %v4952_v55  ;;  %v1620_v41 = vpop.f32.mrb[50].mxu1  ;;  %v1751_v42 = vmax.f32 %v1424_v34, 0.0  ;;  %v1428_v49 = vadd.f32 %v1427_v40, %v4943_v52  ;;  %v1429_v57 = vpop.f32.mrb[51].mxu0 }
 0x17b   : > { %v1753_v48 = vmax.f32 %v1617_v35, 0.0  ;;  %v1621_v56 = vadd.f32 %v1620_v41, %v4946_v53  ;;  %v1622_v58 = vpop.f32.mrb[51].mxu1  ;;  %v1752_v47 = vmax.f32 %v1426_v37, 0.0  ;;  %v1430_v60 = vadd.f32 %v1429_v57, %v4949_v54 }
 0x17c   : > { %v1754_v59 = vmax.f32 %v1619_v39, 0.0  ;;  %v1623_v61 = vadd.f32 %v1622_v58, %v4952_v55  ;;  %v1807_v0 = vadd.f32 %v1806_v25, %v1751_v42  ;;  %v1755_v63 = vmax.f32 %v1428_v49, 0.0 }
 0x17d   : > { %v1881_v62 = vadd.f32 %v1880_v26, %v1753_v48  ;;  %v1757_v1 = vmax.f32 %v1621_v56, 0.0  ;;  %v1844_v5 = vadd.f32 %v1843_v28, %v1752_v47  ;;  %v1756_v9 = vmax.f32 %v1430_v60, 0.0 }
 0x17e   : > { %v1918_v6 = vadd.f32 %v1917_v29, %v1754_v59  ;;  %v1758_v10 = vmax.f32 %v1623_v61, 0.0  ;;  %v1808_v11 = vadd.f32 %v1807_v0, %v1755_v63 }
 0x17f   : > { %v1882_v8 = vadd.f32 %v1881_v62, %v1757_v1  ;;  %v1845_v7 = vadd.f32 %v1844_v5, %v1756_v9  ;;  %v1433_v14 = vpop.f32.mrb[52].mxu0 }
 0x180   : > { %v1919_v13 = vadd.f32 %v1918_v6, %v1758_v10  ;;  %v1626_v15 = vpop.f32.mrb[52].mxu1  ;;  %v1434_v16 = vadd.f32 %v1433_v14, %v4943_v52  ;;  %v1435_v18 = vpop.f32.mrb[53].mxu0 }
 0x181   : > { %v1627_v17 = vadd.f32 %v1626_v15, %v4946_v53  ;;  %v1628_v19 = vpop.f32.mrb[53].mxu1  ;;  %v1436_v20 = vadd.f32 %v1435_v18, %v4949_v54  ;;  %v1437_v21 = vpop.f32.mrb[54].mxu0 }
 0x182   : > { %v1629_v4 = vadd.f32 %v1628_v19, %v4952_v55  ;;  %v1630_v22 = vpop.f32.mrb[54].mxu1  ;;  %v1759_v24 = vmax.f32 %v1434_v16, 0.0  ;;  %v1438_v26 = vadd.f32 %v1437_v21, %v4943_v52  ;;  %v1439_v29 = vpop.f32.mrb[55].mxu0 }
 0x183   : > { %v1761_v25 = vmax.f32 %v1627_v17, 0.0  ;;  %v1631_v28 = vadd.f32 %v1630_v22, %v4946_v53  ;;  %v1632_v31 = vpop.f32.mrb[55].mxu1  ;;  %v1760_v30 = vmax.f32 %v1436_v20, 0.0  ;;  %v1440_v35 = vadd.f32 %v1439_v29, %v4949_v54 }
 0x184   : > { %v1762_v34 = vmax.f32 %v1629_v4, 0.0  ;;  %v1633_v3 = vadd.f32 %v1632_v31, %v4952_v55  ;;  %v1809_v36 = vadd.f32 %v1808_v11, %v1759_v24  ;;  %v1763_v39 = vmax.f32 %v1438_v26, 0.0 }
 0x185   : > { %v1883_v37 = vadd.f32 %v1882_v8, %v1761_v25  ;;  %v1765_v40 = vmax.f32 %v1631_v28, 0.0  ;;  %v1846_v41 = vadd.f32 %v1845_v7, %v1760_v30  ;;  %v1764_v48 = vmax.f32 %v1440_v35, 0.0 }
 0x186   : > { %v1920_v42 = vadd.f32 %v1919_v13, %v1762_v34  ;;  %v1766_v49 = vmax.f32 %v1633_v3, 0.0  ;;  %v1810_v56 = vadd.f32 %v1809_v36, %v1763_v39 }
 0x187   : > { %v1884_v57 = vadd.f32 %v1883_v37, %v1765_v40  ;;  %v1847_v58 = vadd.f32 %v1846_v41, %v1764_v48  ;;  %v1443_v59 = vpop.f32.mrb[56].mxu0 }
 0x188   : > { %v1921_v47 = vadd.f32 %v1920_v42, %v1766_v49  ;;  %v1636_v60 = vpop.f32.mrb[56].mxu1  ;;  %v1444_v61 = vadd.f32 %v1443_v59, %v4943_v52  ;;  %v1445_v62 = vpop.f32.mrb[57].mxu0 }
 0x189   : > { %v1637_v0 = vadd.f32 %v1636_v60, %v4946_v53  ;;  %v1638_v63 = vpop.f32.mrb[57].mxu1  ;;  %v1446_v1 = vadd.f32 %v1445_v62, %v4949_v54  ;;  %v1447_v6 = vpop.f32.mrb[58].mxu0 }
 0x18a   : > { %v1639_v5 = vadd.f32 %v1638_v63, %v4952_v55  ;;  %v1640_v9 = vpop.f32.mrb[58].mxu1  ;;  %v1767_v10 = vmax.f32 %v1444_v61, 0.0  ;;  %v1448_v8 = vadd.f32 %v1447_v6, %v4943_v52  ;;  %v1449_v13 = vpop.f32.mrb[59].mxu0 }
 0x18b   : > { %v1769_v11 = vmax.f32 %v1637_v0, 0.0  ;;  %v1641_v7 = vadd.f32 %v1640_v9, %v4946_v53  ;;  %v1642_v14 = vpop.f32.mrb[59].mxu1  ;;  %v1768_v15 = vmax.f32 %v1446_v1, 0.0  ;;  %v1450_v17 = vadd.f32 %v1449_v13, %v4949_v54 }
 0x18c   : > { %v1770_v16 = vmax.f32 %v1639_v5, 0.0  ;;  %v1643_v18 = vadd.f32 %v1642_v14, %v4952_v55  ;;  %v1811_v19 = vadd.f32 %v1810_v56, %v1767_v10  ;;  %v1771_v4 = vmax.f32 %v1448_v8, 0.0 }
 0x18d   : > { %v1885_v20 = vadd.f32 %v1884_v57, %v1769_v11  ;;  %v1773_v21 = vmax.f32 %v1641_v7, 0.0  ;;  %v1848_v22 = vadd.f32 %v1847_v58, %v1768_v15  ;;  %v1772_v25 = vmax.f32 %v1450_v17, 0.0 }
 0x18e   : > { %v1922_v24 = vadd.f32 %v1921_v47, %v1770_v16  ;;  %v1774_v26 = vmax.f32 %v1643_v18, 0.0  ;;  %v1812_v28 = vadd.f32 %v1811_v19, %v1771_v4 }
 0x18f   : > { %v1886_v29 = vadd.f32 %v1885_v20, %v1773_v21  ;;  %v1849_v31 = vadd.f32 %v1848_v22, %v1772_v25  ;;  %v1453_v34 = vpop.f32.mrb[60].mxu0 }
 0x190   : > { %v1923_v30 = vadd.f32 %v1922_v24, %v1774_v26  ;;  %v1646_v35 = vpop.f32.mrb[60].mxu1  ;;  %v1454_v3 = vadd.f32 %v1453_v34, %v4943_v52  ;;  %v1455_v37 = vpop.f32.mrb[61].mxu0 }
 0x191   : > { %v1647_v36 = vadd.f32 %v1646_v35, %v4946_v53  ;;  %v1648_v39 = vpop.f32.mrb[61].mxu1  ;;  %v1456_v40 = vadd.f32 %v1455_v37, %v4949_v54  ;;  %v1457_v42 = vpop.f32.mrb[62].mxu0 }
 0x192   : > { %v1649_v41 = vadd.f32 %v1648_v39, %v4952_v55  ;;  %v1650_v48 = vpop.f32.mrb[62].mxu1  ;;  %v1775_v49 = vmax.f32 %v1454_v3, 0.0  ;;  %v1458_v57 = vadd.f32 %v1457_v42, %v4943_v52  ;;  %v1459_v47 = vpop.f32.mrb[63].mxu0 }
 0x193   : > { %v1777_v56 = vmax.f32 %v1647_v36, 0.0  ;;  %v1651_v58 = vadd.f32 %v1650_v48, %v4946_v53  ;;  %v1652_v59 = vpop.f32.mrb[63].mxu1  ;;  %v1776_v60 = vmax.f32 %v1456_v40, 0.0  ;;  %v1460_v0 = vadd.f32 %v1459_v47, %v4949_v54  ;;  %v1783_v47 = vld [vmem:[#allocation2] sm:$0xf] }
 0x194   : > { %v1778_v61 = vmax.f32 %v1649_v41, 0.0  ;;  %v1653_v62 = vadd.f32 %v1652_v59, %v4952_v55  ;;  %v1813_v63 = vadd.f32 %v1812_v28, %v1775_v49  ;;  %v1779_v5 = vmax.f32 %v1458_v57, 0.0 }
 0x195   : > { %v1887_v1 = vadd.f32 %v1886_v29, %v1777_v56  ;;  %v1781_v6 = vmax.f32 %v1651_v58, 0.0  ;;  %v1850_v9 = vadd.f32 %v1849_v31, %v1776_v60  ;;  %v1780_v11 = vmax.f32 %v1460_v0, 0.0 }
 0x196   : > { %v1924_v10 = vadd.f32 %v1923_v30, %v1778_v61  ;;  %v1782_v8 = vmax.f32 %v1653_v62, 0.0  ;;  %v1814_v7 = vadd.f32 %v1813_v63, %v1779_v5  ;;  %v4565_v55 = vmov 1966171168  }
 0x197   : > { %v1888_v52 = vadd.f32 %v1887_v1, %v1781_v6  ;;  %v1851_v13 = vadd.f32 %v1850_v9, %v1780_v11  ;;  %v1939_v20 = vunpack.c.l.s4 %v4565_v55  ;;  %v2133_v1 = vld [vmem:[#allocation9 + $0x440] sm:$0xff]  ;;  %v2134_v9 = vld [vmem:[#allocation9 + $0x448] sm:$0xff] }
 0x198   : > { %v1925_v53 = vadd.f32 %v1924_v10, %v1782_v8  ;;  %v1815_v14 = vrot.slane %v1814_v7, 4  ;;  %v2137_v6 = vld [vmem:[#allocation9 + $0x460] sm:$0xff]  ;;  %v2138_v10 = vld [vmem:[#allocation9 + $0x468] sm:$0xff] }
 0x199   : > { %v1889_v15 = vrot.slane %v1888_v52, 4  ;;  %v1852_v16 = vrot.slane %v1851_v13, 4  ;;  %v1940_v31 = vunpack.c.0.s8 %v1939_v20  ;;  %v2141_v8 = vld [vmem:[#allocation9 + $0x480] sm:$0xff]  ;;  %v2150_v20 = vld [vmem:[#allocation9 + $0x4c8] sm:$0xff] }
 0x19a   : > { %v1926_v17 = vrot.slane %v1925_v53, 4  ;;  %v1816_v18 = vadd.f32 %v1815_v14, %v1814_v7  ;;  %v4290_v7 = vcombine.high %v2133_v1, %v2137_v6  ;;  %v2146_v14 = vld [vmem:[#allocation9 + $0x4a8] sm:$0xff]  ;;  %v2153_v55 = vld [vmem:[#allocation9 + $0x4e0] sm:$0xff] }
 0x19b   : > { %v1890_v54 = vadd.f32 %v1889_v15, %v1888_v52  ;;  %v1853_v19 = vadd.f32 %v1852_v16, %v1851_v13  ;;  %v1943_v41 = vsub.s32 %v1940_v31, %v4925_v38  ;;  %v4292_v52 = vcombine.high %v2134_v9, %v2138_v10  ;;  %v2145_v13 = vld [vmem:[#allocation9 + $0x4a0] sm:$0xff] }
 0x19c   : > { %v1927_v4 = vadd.f32 %v1926_v17, %v1925_v53  ;;  %v1817_v21 = vrot.slane %v1816_v18, 2  ;;  %v2142_v53 = vld [vmem:[#allocation9 + $0x488] sm:$0xff]  ;;  %v4289_v16 = vcombine.low %v2133_v1, %v2137_v6  ;;  %v4291_v17 = vcombine.low %v2134_v9, %v2138_v10  ;;  %v2169_v31 = vld [vmem:[#allocation9 + $0x560] sm:$0xff] }
 0x19d   : > { %v1891_v22 = vrot.slane %v1890_v54, 2  ;;  %v1854_v24 = vrot.slane %v1853_v19, 2  ;;  %v4297_v23 = vcombine.low %v2141_v8, %v2145_v13  ;;  %v4299_v27 = vcombine.low %v2142_v53, %v2146_v14  ;;  %v2193_v6 = vld [vmem:[#allocation9 + $0x620] sm:$0xff]  ;;  %v2190_v9 = vld [vmem:[#allocation9 + $0x608] sm:$0xff] }
 0x19e   : > { %v1928_v25 = vrot.slane %v1927_v4, 2  ;;  %v1818_v26 = vadd.f32 %v1817_v21, %v1816_v18  ;;  %v4298_v18 = vcombine.high %v2141_v8, %v2145_v13  ;;  %v2158_v21 = vld [vmem:[#allocation9 + $0x508] sm:$0xff] }
 0x19f   : > { %v1892_v28 = vadd.f32 %v1891_v22, %v1890_v54  ;;  %v1855_v29 = vadd.f32 %v1854_v24, %v1853_v19  ;;  %v4300_v54 = vcombine.high %v2142_v53, %v2146_v14  ;;  %v2149_v19 = vld [vmem:[#allocation9 + $0x4c0] sm:$0xff]  ;;  %v2162_v22 = vld [vmem:[#allocation9 + $0x528] sm:$0xff] }
 0x1a0   : > { %v1929_v30 = vadd.f32 %v1928_v25, %v1927_v4  ;;  %v1819_v34 = vrot.slane %v1818_v26, 1  ;;  %v2154_v4 = vld [vmem:[#allocation9 + $0x4e8] sm:$0xff]  ;;  %v4306_v32 = vcombine.high %v2149_v19, %v2153_v55  ;;  %v4305_v24 = vcombine.low %v2149_v19, %v2153_v55  ;;  %v2197_v53 = vld [vmem:[#allocation9 + $0x640] sm:$0xff] }
 0x1a1   : > { %v1893_v35 = vrot.slane %v1892_v28, 1  ;;  %v1856_v3 = vrot.slane %v1855_v29, 1  ;;  %v4308_v33 = vcombine.high %v2150_v20, %v2154_v4  ;;  %v4307_v25 = vcombine.low %v2150_v20, %v2154_v4  ;;  %v2194_v10 = vld [vmem:[#allocation9 + $0x628] sm:$0xff]  ;;  %v2201_v14 = vld [vmem:[#allocation9 + $0x660] sm:$0xff] }
 0x1a2   : > { %v1930_v36 = vrot.slane %v1929_v30, 1  ;;  %v1820_v37 = vadd.f32 %v1819_v34, %v1818_v26  ;;  %v2170_v34 = vld [vmem:[#allocation9 + $0x568] sm:$0xff]  ;;  %v4348_v13 = vcombine.high %v2190_v9, %v2194_v10  ;;  %v4354_v19 = vcombine.high %v2197_v53, %v2201_v14  ;;  %v2205_v20 = vld [vmem:[#allocation9 + $0x680] sm:$0xff] }
 0x1a3   : > { %v1894_v39 = vadd.f32 %v1893_v35, %v1892_v28  ;;  %v1857_v40 = vadd.f32 %v1856_v3, %v1855_v29  ;;  %v4316_v28 = vcombine.high %v2158_v21, %v2162_v22  ;;  %v2165_v29 = vld [vmem:[#allocation9 + $0x540] sm:$0xff]  ;;  %v4315_v3 = vcombine.low %v2158_v21, %v2162_v22 }
 0x1a4   : > { %v1931_v42 = vadd.f32 %v1930_v36, %v1929_v30  ;;  %v2166_v30 = vld [vmem:[#allocation9 + $0x548] sm:$0xff]  ;;  %v4322_v36 = vcombine.high %v2165_v29, %v2169_v31  ;;  %v2209_v4 = vld [vmem:[#allocation9 + $0x6a0] sm:$0xff] }
 0x1a5   : > { %v1936_v48 = vcombine.low %v1820_v37, %v1857_v40  ;;  %v4324_v37 = vcombine.high %v2166_v30, %v2170_v34  ;;  %v2177_v40 = vld [vmem:[#allocation9 + $0x5a0] sm:$0xff] }
 0x1a6   : > { %v1937_v49 = vcombine.low %v1894_v39, %v1931_v42  ;;  %v2173_v39 = vld [vmem:[#allocation9 + $0x580] sm:$0xff]  ;;  %v2178_v42 = vld [vmem:[#allocation9 + $0x5a8] sm:$0xff] }
 0x1a7   : > { %v1944_v56 = vrot.slane %v1936_v48, %v1943_v41  ;;  %v4321_v48 = vcombine.low %v2165_v29, %v2169_v31  ;;  %v2213_v21 = vld [vmem:[#allocation9 + $0x6c0] sm:$0xff] }
 0x1a8   : > { %v1951_v57 = vrot.slane %v1937_v49, %v1943_v41  ;;  %v4323_v49 = vcombine.low %v2166_v30, %v2170_v34  ;;  %v2217_v22 = vld [vmem:[#allocation9 + $0x6e0] sm:$0xff] }
 0x1a9   : > { %v4370_v29 = vcombine.high %v2213_v21, %v2217_v22  ;;  %v2221_v30 = vld [vmem:[#allocation9 + $0x700] sm:$0xff] }
 0x1aa   : > { %v1952_v58 = vcombine.low %v1944_v56, %v1951_v57  ;;  %v4330_v56 = vcombine.high %v2173_v39, %v2177_v40  ;;  %v2225_v34 = vld [vmem:[#allocation9 + $0x720] sm:$0xff] }
 0x1ac   : > { %v1959_v59 = vrot.slane %v1952_v58, %v1943_v41  ;;  %v2174_v41 = vld [vmem:[#allocation9 + $0x588] sm:$0xff]  ;;  %v2181_v58 = vld [vmem:[#allocation9 + $0x5c0] sm:$0xff] }
 0x1ad   : > { %v4332_v57 = vcombine.high %v2174_v41, %v2178_v42 }
 0x1ae   : > { %v1961_v60 = vadd.f32 %v1959_v59, %v1783_v47  ;;  %v2185_v47 = vld [vmem:[#allocation9 + $0x5e0] sm:$0xff]  ;;  %v2182_v59 = vld [vmem:[#allocation9 + $0x5c8] sm:$0xff] }
 0x1af   : > { %v4337_v8 = vcombine.low %v2181_v58, %v2185_v47 }
 0x1b0   : > { %1966 = vst.msk [vmem:[#allocation2] sm:$0xf] %vm4973_vm2, %v1961_v60  ;;  %v2186_v60 = vld [vmem:[#allocation9 + $0x5e8] sm:$0xff] }
 0x1b1   : > { %v4340_v1 = vcombine.high %v2182_v59, %v2186_v60 }
 0x1b7   : > { %v1970_v61 = vld [vmem:[#allocation2] sm:$0xf] }
 0x1b8   : > { %v5121_v0 = vmul.f32 0.00390625, %v1970_v61  ;;  %v4329_v61 = vcombine.low %v2173_v39, %v2177_v40  ;;  %v4378_v39 = vcombine.high %v2221_v30, %v2225_v34 }
 0x1ba   : > { %v1980_v62 = vrot.slane %v5121_v0, %v4937_v50  ;;  %v1976_v63 = vrot.slane %v5121_v0, %v4928_v45  ;;  %v1988_v5 = vrot.slane %v5121_v0, %v4940_v51 }
 0x1bc   : > { %v5129_v11 = vpack.c.bf16 %v1980_v62, %v1980_v62  ;;  %v5131_v12 = vpack.c.bf16 %v1976_v63, %v1976_v63  ;;  %v5137_v15 = vpack.c.bf16 %v1988_v5, %v1988_v5  ;;  %v4331_v62 = vcombine.low %v2174_v41, %v2178_v42  ;;  %v2189_v5 = vld [vmem:[#allocation9 + $0x600] sm:$0xff] }
 0x1bd   : > { %v4338_v63 = vcombine.high %v2181_v58, %v2185_v47  ;;  %v2229_v41 = vld [vmem:[#allocation9 + $0x740] sm:$0xff] }
 0x1be   : > { %3607 = vmatprep.mubr.bf16.mxu0 %v5129_v11  ;;  %3689 = vmatprep.mubr.bf16.mxu1 %v5129_v11  ;;  %v2233_v42 = vld [vmem:[#allocation9 + $0x760] sm:$0xff] }
 0x1bf   : > { %3608 = vmatmul.mubr.bf16.vlgmr.msra.gmra.mrb[64].mxu0 %v5131_v12  ;;  %3690 = vmatmul.mubr.bf16.vlgmr.msra.gmra.mrb[64].mxu1 %v5131_v12  ;;  %v4386_v58 = vcombine.high %v2229_v41, %v2233_v42 }
 0x1c0   : > { %3617 = vmatpush1.bf16.msra.mxu0 %v4281_v43  ;;  %3699 = vmatpush1.bf16.msra.mxu1 %v4283_v44  ;;  %v2157_v43 = vld [vmem:[#allocation9 + $0x500] sm:$0xff] }
 0x1c1   : > { %3648 = vmatprep.mubr.bf16.mxu0 %v5137_v15  ;;  %3730 = vmatprep.mubr.bf16.mxu1 %v5137_v15  ;;  %v2161_v44 = vld [vmem:[#allocation9 + $0x520] sm:$0xff] }
 0x1c2   : > { %3618 = vmatprep.subr.bf16.mxu0 %v4290_v7  ;;  %3700 = vmatprep.subr.bf16.mxu1 %v4292_v52  ;;  %v4314_v26 = vcombine.high %v2157_v43, %v2161_v44  ;;  %v4313_v35 = vcombine.low %v2157_v43, %v2161_v44  ;;  %v4339_v7 = vcombine.low %v2182_v59, %v2186_v60  ;;  %v2237_v59 = vld [vmem:[#allocation9 + $0x780] sm:$0xff] }
 0x1c3   : > { %v4346_v52 = vcombine.high %v2189_v5, %v2193_v6  ;;  %v4362_v43 = vcombine.high %v2205_v20, %v2209_v4  ;;  %v2241_v60 = vld [vmem:[#allocation9 + $0x7a0] sm:$0xff] }
 0x1c4   : > { %3619 = vmatpush1.bf16.msra.mxu0 %v4289_v16  ;;  %3701 = vmatpush1.bf16.msra.mxu1 %v4291_v17  ;;  %v2198_v16 = vld [vmem:[#allocation9 + $0x648] sm:$0xff] }
 0x1c5   : > { %3620 = vmatprep.subr.bf16.mxu0 %v4298_v18  ;;  %3702 = vmatprep.subr.bf16.mxu1 %v4300_v54  ;;  %v2202_v17 = vld [vmem:[#allocation9 + $0x668] sm:$0xff]  ;;  %v4345_v18 = vcombine.low %v2189_v5, %v2193_v6  ;;  %v4347_v54 = vcombine.low %v2190_v9, %v2194_v10  ;;  %v4394_v5 = vcombine.high %v2237_v59, %v2241_v60  ;;  %v2245_v9 = vld [vmem:[#allocation9 + $0x7c0] sm:$0xff] }
 0x1c6   : > { %v4356_v55 = vcombine.high %v2198_v16, %v2202_v17  ;;  %v2249_v10 = vld [vmem:[#allocation9 + $0x7e0] sm:$0xff] }
 0x1c8   : > { %3621 = vmatpush1.bf16.msra.mxu0 %v4297_v23  ;;  %3703 = vmatpush1.bf16.msra.mxu1 %v4299_v27  ;;  %v2206_v23 = vld [vmem:[#allocation9 + $0x688] sm:$0xff] }
 0x1c9   : > { %3622 = vmatprep.subr.bf16.mxu0 %v4306_v32  ;;  %3704 = vmatprep.subr.bf16.mxu1 %v4308_v33  ;;  %v2210_v27 = vld [vmem:[#allocation9 + $0x6a8] sm:$0xff]  ;;  %v4353_v32 = vcombine.low %v2197_v53, %v2201_v14  ;;  %v4355_v33 = vcombine.low %v2198_v16, %v2202_v17  ;;  %v4402_v53 = vcombine.high %v2245_v9, %v2249_v10  ;;  %v1999_v16 = vld [vmem:[#allocation9 + $0x10] sm:$0xff] }
 0x1ca   : > { %v4364_v44 = vcombine.high %v2206_v23, %v2210_v27  ;;  %v2003_v17 = vld [vmem:[#allocation9 + $0x30] sm:$0xff] }
 0x1cc   : > { %3623 = vmatpush1.bf16.msra.mxu0 %v4305_v24  ;;  %3705 = vmatpush1.bf16.msra.mxu1 %v4307_v25  ;;  %v2214_v24 = vld [vmem:[#allocation9 + $0x6c8] sm:$0xff] }
 0x1cd   : > { %3624 = vmatprep.subr.bf16.mxu0 %v4314_v26  ;;  %3706 = vmatprep.subr.bf16.mxu1 %v4316_v28  ;;  %v2218_v25 = vld [vmem:[#allocation9 + $0x6e8] sm:$0xff]  ;;  %v4361_v26 = vcombine.low %v2205_v20, %v2209_v4  ;;  %v4363_v28 = vcombine.low %v2206_v23, %v2210_v27  ;;  %v1984_v20 = vrot.slane %v5121_v0, %v4931_v46  ;;  %v2007_v27 = vld [vmem:[#allocation9 + $0x50] sm:$0xff]  ;;  %v2016_v0 = vld [vmem:[#allocation9 + $0x98] sm:$0xff] }
 0x1ce   : > { %v4372_v31 = vcombine.high %v2214_v24, %v2218_v25  ;;  %v4158_v4 = vcombine.high %v1999_v16, %v2003_v17 }
 0x1d0   : > { %3625 = vmatpush1.bf16.msra.mxu0 %v4313_v35  ;;  %3707 = vmatpush1.bf16.msra.mxu1 %v4315_v3  ;;  %v2222_v35 = vld [vmem:[#allocation9 + $0x708] sm:$0xff] }
 0x1d1   : > { %3626 = vmatprep.subr.bf16.mxu0 %v4322_v36  ;;  %3708 = vmatprep.subr.bf16.mxu1 %v4324_v37  ;;  %v2226_v3 = vld [vmem:[#allocation9 + $0x728] sm:$0xff]  ;;  %v4369_v36 = vcombine.low %v2213_v21, %v2217_v22  ;;  %v4371_v37 = vcombine.low %v2214_v24, %v2218_v25  ;;  %v5149_v21 = vpack.c.bf16 %v1984_v20, %v1984_v20 }
 0x1d2   : > { %v4380_v40 = vcombine.high %v2222_v35, %v2226_v3 }
 0x1d4   : > { %3627 = vmatpush1.bf16.msra.mxu0 %v4321_v48  ;;  %3709 = vmatpush1.bf16.msra.mxu1 %v4323_v49  ;;  %v2230_v48 = vld [vmem:[#allocation9 + $0x748] sm:$0xff] }
 0x1d5   : > { %3628 = vmatprep.subr.bf16.mxu0 %v4330_v56  ;;  %3710 = vmatprep.subr.bf16.mxu1 %v4332_v57  ;;  %v2234_v49 = vld [vmem:[#allocation9 + $0x768] sm:$0xff]  ;;  %v4377_v56 = vcombine.low %v2221_v30, %v2225_v34  ;;  %v4379_v57 = vcombine.low %v2222_v35, %v2226_v3  ;;  %v2023_v3 = vld [vmem:[#allocation9 + $0xd0] sm:$0xff] }
 0x1d6   : > { %v4388_v47 = vcombine.high %v2230_v48, %v2234_v49 }
 0x1d8   : > { %3629 = vmatpush1.bf16.msra.mxu0 %v4329_v61  ;;  %3711 = vmatpush1.bf16.msra.mxu1 %v4331_v62  ;;  %v2238_v61 = vld [vmem:[#allocation9 + $0x788] sm:$0xff] }
 0x1d9   : > { %3630 = vmatprep.subr.bf16.mxu0 %v4338_v63  ;;  %3712 = vmatprep.subr.bf16.mxu1 %v4340_v1  ;;  %v2242_v62 = vld [vmem:[#allocation9 + $0x7a8] sm:$0xff]  ;;  %v4385_v63 = vcombine.low %v2229_v41, %v2233_v42  ;;  %v4387_v1 = vcombine.low %v2230_v48, %v2234_v49  ;;  %v2031_v49 = vld [vmem:[#allocation9 + $0x110] sm:$0xff] }
 0x1da   : > { %v4396_v6 = vcombine.high %v2238_v61, %v2242_v62 }
 0x1dc   : > { %3631 = vmatpush1.bf16.msra.mxu0 %v4337_v8  ;;  %3713 = vmatpush1.bf16.msra.mxu1 %v4339_v7  ;;  %v2246_v8 = vld [vmem:[#allocation9 + $0x7c8] sm:$0xff] }
 0x1dd   : > { %3632 = vmatprep.subr.bf16.mxu0 %v4346_v52  ;;  %3714 = vmatprep.subr.bf16.mxu1 %v4348_v13  ;;  %v2250_v7 = vld [vmem:[#allocation9 + $0x7e8] sm:$0xff]  ;;  %v4393_v52 = vcombine.low %v2237_v59, %v2241_v60  ;;  %v4395_v13 = vcombine.low %v2238_v61, %v2242_v62  ;;  %v2039_v61 = vld [vmem:[#allocation9 + $0x150] sm:$0xff] }
 0x1de   : > { %v4404_v14 = vcombine.high %v2246_v8, %v2250_v7  ;;  %v2043_v62 = vld [vmem:[#allocation9 + $0x170] sm:$0xff] }
 0x1e0   : > { %3633 = vmatpush1.bf16.msra.mxu0 %v4345_v18  ;;  %3715 = vmatpush1.bf16.msra.mxu1 %v4347_v54  ;;  %v2000_v18 = vld [vmem:[#allocation9 + $0x18] sm:$0xff] }
 0x1e1   : > { %3634 = vmatprep.subr.bf16.mxu0 %v4354_v19  ;;  %3716 = vmatprep.subr.bf16.mxu1 %v4356_v55  ;;  %v2004_v54 = vld [vmem:[#allocation9 + $0x38] sm:$0xff]  ;;  %v4401_v19 = vcombine.low %v2245_v9, %v2249_v10  ;;  %v4403_v55 = vcombine.low %v2246_v8, %v2250_v7  ;;  %v4198_v9 = vcombine.high %v2039_v61, %v2043_v62  ;;  %v2047_v8 = vld [vmem:[#allocation9 + $0x190] sm:$0xff] }
 0x1e2   : > { %v4160_v23 = vcombine.high %v2000_v18, %v2004_v54  ;;  %v4159_v22 = vcombine.low %v2000_v18, %v2004_v54  ;;  %v2051_v7 = vld [vmem:[#allocation9 + $0x1b0] sm:$0xff] }
 0x1e3   : > { %v2055_v18 = vld [vmem:[#allocation9 + $0x1d0] sm:$0xff]  ;;  %v4205_v20 = vcombine.low %v2047_v8, %v2051_v7 }
 0x1e4   : > { %3635 = vmatpush1.bf16.msra.mxu0 %v4353_v32  ;;  %3717 = vmatpush1.bf16.msra.mxu1 %v4355_v33  ;;  %v2011_v32 = vld [vmem:[#allocation9 + $0x70] sm:$0xff]  ;;  %v2008_v33 = vld [vmem:[#allocation9 + $0x58] sm:$0xff] }
 0x1e5   : > { %3636 = vmatprep.subr.bf16.mxu0 %v4362_v43  ;;  %3718 = vmatprep.subr.bf16.mxu1 %v4364_v44  ;;  %v2012_v43 = vld [vmem:[#allocation9 + $0x78] sm:$0xff]  ;;  %v4157_v44 = vcombine.low %v1999_v16, %v2003_v17  ;;  %v4166_v24 = vcombine.high %v2007_v27, %v2011_v32  ;;  %v4206_v16 = vcombine.high %v2047_v8, %v2051_v7  ;;  %v2059_v54 = vld [vmem:[#allocation9 + $0x1f0] sm:$0xff] }
 0x1e6   : > { %v4168_v25 = vcombine.high %v2008_v33, %v2012_v43  ;;  %v4167_v30 = vcombine.low %v2008_v33, %v2012_v43  ;;  %v2067_v33 = vld [vmem:[#allocation9 + $0x230] sm:$0xff]  ;;  %v2064_v43 = vld [vmem:[#allocation9 + $0x218] sm:$0xff] }
 0x1e7   : > { %v2103_v7 = vld [vmem:[#allocation9 + $0x350] sm:$0xff] }
 0x1e8   : > { %3637 = vmatpush1.bf16.msra.mxu0 %v4361_v26  ;;  %3719 = vmatpush1.bf16.msra.mxu1 %v4363_v28  ;;  %v2015_v26 = vld [vmem:[#allocation9 + $0x90] sm:$0xff] }
 0x1e9   : > { %3638 = vmatprep.subr.bf16.mxu0 %v4370_v29  ;;  %3720 = vmatprep.subr.bf16.mxu1 %v4372_v31  ;;  %v2019_v28 = vld [vmem:[#allocation9 + $0xb0] sm:$0xff]  ;;  %v2020_v29 = vld [vmem:[#allocation9 + $0xb8] sm:$0xff]  ;;  %v4165_v31 = vcombine.low %v2007_v27, %v2011_v32 }
 0x1ea   : > { %v4174_v34 = vcombine.high %v2015_v26, %v2019_v28  ;;  %v4176_v35 = vcombine.high %v2016_v0, %v2020_v29  ;;  %v4175_v41 = vcombine.low %v2016_v0, %v2020_v29  ;;  %v2063_v32 = vld [vmem:[#allocation9 + $0x210] sm:$0xff]  ;;  %v2072_v29 = vld [vmem:[#allocation9 + $0x258] sm:$0xff] }
 0x1eb   : > { %v2075_v0 = vld [vmem:[#allocation9 + $0x270] sm:$0xff] }
 0x1ec   : > { %3639 = vmatpush1.bf16.msra.mxu0 %v4369_v36  ;;  %3721 = vmatpush1.bf16.msra.mxu1 %v4371_v37  ;;  %v2027_v36 = vld [vmem:[#allocation9 + $0xf0] sm:$0xff]  ;;  %v2024_v37 = vld [vmem:[#allocation9 + $0xd8] sm:$0xff] }
 0x1ed   : > { %3640 = vmatprep.subr.bf16.mxu0 %v4378_v39  ;;  %3722 = vmatprep.subr.bf16.mxu1 %v4380_v40  ;;  %v2028_v39 = vld [vmem:[#allocation9 + $0xf8] sm:$0xff]  ;;  %v4173_v40 = vcombine.low %v2015_v26, %v2019_v28  ;;  %v4182_v42 = vcombine.high %v2023_v3, %v2027_v36  ;;  %v2071_v28 = vld [vmem:[#allocation9 + $0x250] sm:$0xff] }
 0x1ee   : > { %v4184_v48 = vcombine.high %v2024_v37, %v2028_v39 }
 0x1f0   : > { %3641 = vmatpush1.bf16.msra.mxu0 %v4377_v56  ;;  %3723 = vmatpush1.bf16.msra.mxu1 %v4379_v57  ;;  %v2035_v56 = vld [vmem:[#allocation9 + $0x130] sm:$0xff]  ;;  %v2036_v57 = vld [vmem:[#allocation9 + $0x138] sm:$0xff] }
 0x1f1   : > { %3642 = vmatprep.subr.bf16.mxu0 %v4386_v58  ;;  %3724 = vmatprep.subr.bf16.mxu1 %v4388_v47  ;;  %v4181_v58 = vcombine.low %v2023_v3, %v2027_v36  ;;  %v4183_v47 = vcombine.low %v2024_v37, %v2028_v39  ;;  %v4190_v59 = vcombine.high %v2031_v49, %v2035_v56  ;;  %v2079_v36 = vld [vmem:[#allocation9 + $0x290] sm:$0xff]  ;;  %v2080_v39 = vld [vmem:[#allocation9 + $0x298] sm:$0xff] }
 0x1f2   : > { %v2083_v37 = vld [vmem:[#allocation9 + $0x2b0] sm:$0xff] }
 0x1f4   : > { %3643 = vmatpush1.bf16.msra.mxu0 %v4385_v63  ;;  %3725 = vmatpush1.bf16.msra.mxu1 %v4387_v1  ;;  %v2040_v63 = vld [vmem:[#allocation9 + $0x158] sm:$0xff] }
 0x1f5   : > { %3644 = vmatprep.subr.bf16.mxu0 %v4394_v5  ;;  %3726 = vmatprep.subr.bf16.mxu1 %v4396_v6  ;;  %v2044_v1 = vld [vmem:[#allocation9 + $0x178] sm:$0xff]  ;;  %v4189_v5 = vcombine.low %v2031_v49, %v2035_v56  ;;  %v2087_v56 = vld [vmem:[#allocation9 + $0x2d0] sm:$0xff] }
 0x1f6   : > { %v4200_v10 = vcombine.high %v2040_v63, %v2044_v1 }
 0x1f8   : > { %3645 = vmatpush1.bf16.msra.mxu0 %v4393_v52  ;;  %3727 = vmatpush1.bf16.msra.mxu1 %v4395_v13  ;;  %v2048_v52 = vld [vmem:[#allocation9 + $0x198] sm:$0xff] }
 0x1f9   : > { %3646 = vmatprep.subr.bf16.mxu0 %v4402_v53  ;;  %3728 = vmatprep.subr.bf16.mxu1 %v4404_v14  ;;  %v2052_v13 = vld [vmem:[#allocation9 + $0x1b8] sm:$0xff]  ;;  %v4197_v53 = vcombine.low %v2039_v61, %v2043_v62  ;;  %v4199_v14 = vcombine.low %v2040_v63, %v2044_v1  ;;  %v2095_v62 = vld [vmem:[#allocation9 + $0x310] sm:$0xff] }
 0x1fa   : > { %v4208_v17 = vcombine.high %v2048_v52, %v2052_v13  ;;  %v2099_v63 = vld [vmem:[#allocation9 + $0x330] sm:$0xff]  ;;  %v2096_v1 = vld [vmem:[#allocation9 + $0x318] sm:$0xff] }
 0x1fc   : > { %3647 = vmatpush1.bf16.msra.mxu0 %v4401_v19  ;;  %3729 = vmatpush1.bf16.msra.mxu1 %v4403_v55  ;;  %v2056_v19 = vld [vmem:[#allocation9 + $0x1d8] sm:$0xff] }
 0x1fd   : > { %3739 = vmatprep.subr.bf16.mxu0 %v4158_v4  ;;  %3821 = vmatprep.subr.bf16.mxu1 %v4160_v23  ;;  %v2060_v55 = vld [vmem:[#allocation9 + $0x1f8] sm:$0xff]  ;;  %v4207_v4 = vcombine.low %v2048_v52, %v2052_v13  ;;  %v4214_v23 = vcombine.high %v2055_v18, %v2059_v54  ;;  %v2107_v52 = vld [vmem:[#allocation9 + $0x370] sm:$0xff] }
 0x1fe   : > { %v4216_v27 = vcombine.high %v2056_v19, %v2060_v55  ;;  %v2104_v13 = vld [vmem:[#allocation9 + $0x358] sm:$0xff] }
 0x1ff   : > { %3649 = vmatmul.mubr.bf16.vlgmr.msra.gmra.mrb[64].mxu0 %v5149_v21  ;;  %3731 = vmatmul.mubr.bf16.vlgmr.msra.gmra.mrb[64].mxu1 %v5149_v21 }
 0x200   : > { %3740 = vmatpush1.bf16.msra.mxu0 %v4157_v44  ;;  %3771 = vmatprep.mubr.bf16.mxu0 %v5129_v11  ;;  %v2068_v44 = vld [vmem:[#allocation9 + $0x238] sm:$0xff] }
 0x201   : > { %3822 = vmatpush1.bf16.msra.mxu1 %v4159_v22  ;;  %3853 = vmatprep.mubr.bf16.mxu1 %v5129_v11  ;;  %v2032_v11 = vld [vmem:[#allocation9 + $0x118] sm:$0xff]  ;;  %v4213_v22 = vcombine.low %v2055_v18, %v2059_v54  ;;  %v4224_v26 = vcombine.high %v2064_v43, %v2068_v44  ;;  %v2111_v54 = vld [vmem:[#allocation9 + $0x390] sm:$0xff] }
 0x202   : > { %3741 = vmatprep.subr.bf16.mxu0 %v4166_v24  ;;  %3823 = vmatprep.subr.bf16.mxu1 %v4168_v25  ;;  %v4192_v60 = vcombine.high %v2032_v11, %v2036_v57  ;;  %v4191_v6 = vcombine.low %v2032_v11, %v2036_v57  ;;  %v4215_v24 = vcombine.low %v2056_v19, %v2060_v55  ;;  %v2091_v11 = vld [vmem:[#allocation9 + $0x2f0] sm:$0xff]  ;;  %v2088_v57 = vld [vmem:[#allocation9 + $0x2d8] sm:$0xff] }
 0x203   : > { %v4222_v25 = vcombine.high %v2063_v32, %v2067_v33  ;;  %v2115_v19 = vld [vmem:[#allocation9 + $0x3b0] sm:$0xff]  ;;  %v2112_v55 = vld [vmem:[#allocation9 + $0x398] sm:$0xff] }
 0x204   : > { %3742 = vmatpush1.bf16.msra.mxu0 %v4165_v31  ;;  %v2076_v31 = vld [vmem:[#allocation9 + $0x278] sm:$0xff] }
 0x205   : > { %3824 = vmatpush1.bf16.msra.mxu1 %v4167_v30  ;;  %3743 = vmatprep.subr.bf16.mxu0 %v4174_v34  ;;  %v4221_v30 = vcombine.low %v2063_v32, %v2067_v33  ;;  %v4223_v34 = vcombine.low %v2064_v43, %v2068_v44  ;;  %v4232_v3 = vcombine.high %v2072_v29, %v2076_v31  ;;  %v2119_v33 = vld [vmem:[#allocation9 + $0x3d0] sm:$0xff]  ;;  %v2120_v44 = vld [vmem:[#allocation9 + $0x3d8] sm:$0xff] }
 0x206   : > { %3825 = vmatprep.subr.bf16.mxu1 %v4176_v35  ;;  %v4230_v35 = vcombine.high %v2071_v28, %v2075_v0  ;;  %v2123_v43 = vld [vmem:[#allocation9 + $0x3f0] sm:$0xff] }
 0x208   : > { %3744 = vmatpush1.bf16.msra.mxu0 %v4173_v40  ;;  %v2084_v40 = vld [vmem:[#allocation9 + $0x2b8] sm:$0xff] }
 0x209   : > { %3826 = vmatpush1.bf16.msra.mxu1 %v4175_v41  ;;  %3745 = vmatprep.subr.bf16.mxu0 %v4182_v42  ;;  %v4229_v41 = vcombine.low %v2071_v28, %v2075_v0  ;;  %v4231_v42 = vcombine.low %v2072_v29, %v2076_v31  ;;  %v4240_v49 = vcombine.high %v2080_v39, %v2084_v40  ;;  %v2127_v0 = vld [vmem:[#allocation9 + $0x410] sm:$0xff]  ;;  %v2128_v31 = vld [vmem:[#allocation9 + $0x418] sm:$0xff] }
 0x20a   : > { %3827 = vmatprep.subr.bf16.mxu1 %v4184_v48  ;;  %v4238_v48 = vcombine.high %v2079_v36, %v2083_v37  ;;  %v2131_v29 = vld [vmem:[#allocation9 + $0x430] sm:$0xff] }
 0x20c   : > { %3746 = vmatpush1.bf16.msra.mxu0 %v4181_v58  ;;  %v2092_v58 = vld [vmem:[#allocation9 + $0x2f8] sm:$0xff] }
 0x20d   : > { %3828 = vmatpush1.bf16.msra.mxu1 %v4183_v47  ;;  %3747 = vmatprep.subr.bf16.mxu0 %v4190_v59  ;;  %v4237_v47 = vcombine.low %v2079_v36, %v2083_v37  ;;  %v4239_v59 = vcombine.low %v2080_v39, %v2084_v40  ;;  %v4248_v61 = vcombine.high %v2088_v57, %v2092_v58  ;;  %v2135_v37 = vld [vmem:[#allocation9 + $0x450] sm:$0xff] }
 0x20e   : > { %3829 = vmatprep.subr.bf16.mxu1 %v4192_v60  ;;  %v4246_v60 = vcombine.high %v2087_v56, %v2091_v11  ;;  %v2139_v39 = vld [vmem:[#allocation9 + $0x470] sm:$0xff]  ;;  %v4285_v40 = vcombine.low %v2127_v0, %v2131_v29 }
 0x210   : > { %3748 = vmatpush1.bf16.msra.mxu0 %v4189_v5  ;;  %v2100_v5 = vld [vmem:[#allocation9 + $0x338] sm:$0xff] }
 0x211   : > { %3830 = vmatpush1.bf16.msra.mxu1 %v4191_v6  ;;  %3749 = vmatprep.subr.bf16.mxu0 %v4198_v9  ;;  %v4245_v6 = vcombine.low %v2087_v56, %v2091_v11  ;;  %v4247_v9 = vcombine.low %v2088_v57, %v2092_v58  ;;  %v4256_v8 = vcombine.high %v2096_v1, %v2100_v5  ;;  %v2143_v56 = vld [vmem:[#allocation9 + $0x490] sm:$0xff]  ;;  %v2144_v58 = vld [vmem:[#allocation9 + $0x498] sm:$0xff] }
 0x212   : > { %3831 = vmatprep.subr.bf16.mxu1 %v4200_v10  ;;  %v4254_v10 = vcombine.high %v2095_v62, %v2099_v63  ;;  %v2147_v11 = vld [vmem:[#allocation9 + $0x4b0] sm:$0xff] }
 0x214   : > { %3750 = vmatpush1.bf16.msra.mxu0 %v4197_v53  ;;  %v2108_v53 = vld [vmem:[#allocation9 + $0x378] sm:$0xff] }
 0x215   : > { %3832 = vmatpush1.bf16.msra.mxu1 %v4199_v14  ;;  %3751 = vmatprep.subr.bf16.mxu0 %v4206_v16  ;;  %v4253_v14 = vcombine.low %v2095_v62, %v2099_v63  ;;  %v4255_v16 = vcombine.low %v2096_v1, %v2100_v5  ;;  %v4264_v18 = vcombine.high %v2104_v13, %v2108_v53  ;;  %v2151_v63 = vld [vmem:[#allocation9 + $0x4d0] sm:$0xff]  ;;  %v2152_v5 = vld [vmem:[#allocation9 + $0x4d8] sm:$0xff] }
 0x216   : > { %3833 = vmatprep.subr.bf16.mxu1 %v4208_v17  ;;  %v4262_v17 = vcombine.high %v2103_v7, %v2107_v52  ;;  %v2155_v1 = vld [vmem:[#allocation9 + $0x4f0] sm:$0xff] }
 0x218   : > { %3752 = vmatpush1.bf16.msra.mxu0 %v4205_v20  ;;  %v2116_v20 = vld [vmem:[#allocation9 + $0x3b8] sm:$0xff] }
 0x219   : > { %3834 = vmatpush1.bf16.msra.mxu1 %v4207_v4  ;;  %3753 = vmatprep.subr.bf16.mxu0 %v4214_v23  ;;  %v4261_v4 = vcombine.low %v2103_v7, %v2107_v52  ;;  %v4263_v23 = vcombine.low %v2104_v13, %v2108_v53  ;;  %v4272_v32 = vcombine.high %v2112_v55, %v2116_v20  ;;  %v2159_v7 = vld [vmem:[#allocation9 + $0x510] sm:$0xff]  ;;  %v2160_v13 = vld [vmem:[#allocation9 + $0x518] sm:$0xff] }
 0x21a   : > { %3835 = vmatprep.subr.bf16.mxu1 %v4216_v27  ;;  %v4270_v27 = vcombine.high %v2111_v54, %v2115_v19  ;;  %v2163_v52 = vld [vmem:[#allocation9 + $0x530] sm:$0xff]  ;;  %v2164_v53 = vld [vmem:[#allocation9 + $0x538] sm:$0xff] }
 0x21c   : > { %3754 = vmatpush1.bf16.msra.mxu0 %v4213_v22  ;;  %v2124_v22 = vld [vmem:[#allocation9 + $0x3f8] sm:$0xff] }
 0x21d   : > { %3836 = vmatpush1.bf16.msra.mxu1 %v4215_v24  ;;  %3755 = vmatprep.subr.bf16.mxu0 %v4222_v25  ;;  %v4269_v24 = vcombine.low %v2111_v54, %v2115_v19  ;;  %v4271_v25 = vcombine.low %v2112_v55, %v2116_v20  ;;  %v4280_v28 = vcombine.high %v2120_v44, %v2124_v22  ;;  %v2171_v54 = vld [vmem:[#allocation9 + $0x570] sm:$0xff]  ;;  %v2168_v19 = vld [vmem:[#allocation9 + $0x558] sm:$0xff] }
 0x21e   : > { %3837 = vmatprep.subr.bf16.mxu1 %v4224_v26  ;;  %v4278_v26 = vcombine.high %v2119_v33, %v2123_v43  ;;  %v2172_v55 = vld [vmem:[#allocation9 + $0x578] sm:$0xff]  ;;  %v4317_v20 = vcombine.low %v2159_v7, %v2163_v52 }
 0x220   : > { %3756 = vmatpush1.bf16.msra.mxu0 %v4221_v30  ;;  %v2132_v30 = vld [vmem:[#allocation9 + $0x438] sm:$0xff] }
 0x221   : > { %3838 = vmatpush1.bf16.msra.mxu1 %v4223_v34  ;;  %3757 = vmatprep.subr.bf16.mxu0 %v4230_v35  ;;  %v4277_v34 = vcombine.low %v2119_v33, %v2123_v43  ;;  %v4279_v35 = vcombine.low %v2120_v44, %v2124_v22  ;;  %v4288_v36 = vcombine.high %v2128_v31, %v2132_v30  ;;  %v2179_v33 = vld [vmem:[#allocation9 + $0x5b0] sm:$0xff]  ;;  %v2176_v43 = vld [vmem:[#allocation9 + $0x598] sm:$0xff] }
 0x222   : > { %3839 = vmatprep.subr.bf16.mxu1 %v4232_v3  ;;  %v4286_v3 = vcombine.high %v2127_v0, %v2131_v29  ;;  %v2180_v44 = vld [vmem:[#allocation9 + $0x5b8] sm:$0xff]  ;;  %v2187_v0 = vld [vmem:[#allocation9 + $0x5f0] sm:$0xff] }
 0x223   : > { %v2184_v29 = vld [vmem:[#allocation9 + $0x5d8] sm:$0xff] }
 0x224   : > { %3758 = vmatpush1.bf16.msra.mxu0 %v4229_v41  ;;  %v2136_v41 = vld [vmem:[#allocation9 + $0x458] sm:$0xff] }
 0x225   : > { %3840 = vmatpush1.bf16.msra.mxu1 %v4231_v42  ;;  %3759 = vmatprep.subr.bf16.mxu0 %v4238_v48  ;;  %v2140_v42 = vld [vmem:[#allocation9 + $0x478] sm:$0xff]  ;;  %v4287_v48 = vcombine.low %v2128_v31, %v2132_v30 }
 0x226   : > { %3841 = vmatprep.subr.bf16.mxu1 %v4240_v49  ;;  %v4294_v49 = vcombine.high %v2135_v37, %v2139_v39  ;;  %v4296_v57 = vcombine.high %v2136_v41, %v2140_v42  ;;  %v2188_v31 = vld [vmem:[#allocation9 + $0x5f8] sm:$0xff] }
 0x228   : > { %3760 = vmatpush1.bf16.msra.mxu0 %v4237_v47  ;;  %v2148_v47 = vld [vmem:[#allocation9 + $0x4b8] sm:$0xff] }
 0x229   : > { %3842 = vmatpush1.bf16.msra.mxu1 %v4239_v59  ;;  %3761 = vmatprep.subr.bf16.mxu0 %v4246_v60  ;;  %v4293_v59 = vcombine.low %v2135_v37, %v2139_v39  ;;  %v4295_v60 = vcombine.low %v2136_v41, %v2140_v42  ;;  %v4304_v62 = vcombine.high %v2144_v58, %v2148_v47  ;;  %v2195_v37 = vld [vmem:[#allocation9 + $0x630] sm:$0xff]  ;;  %v2192_v39 = vld [vmem:[#allocation9 + $0x618] sm:$0xff] }
 0x22a   : > { %3843 = vmatprep.subr.bf16.mxu1 %v4248_v61  ;;  %v4302_v61 = vcombine.high %v2143_v56, %v2147_v11  ;;  %v4343_v42 = vcombine.low %v2184_v29, %v2188_v31 }
 0x22c   : > { %3762 = vmatpush1.bf16.msra.mxu0 %v4245_v6  ;;  %v2156_v6 = vld [vmem:[#allocation9 + $0x4f8] sm:$0xff] }
 0x22d   : > { %3844 = vmatpush1.bf16.msra.mxu1 %v4247_v9  ;;  %3763 = vmatprep.subr.bf16.mxu0 %v4254_v10  ;;  %v4301_v9 = vcombine.low %v2143_v56, %v2147_v11  ;;  %v4310_v10 = vcombine.high %v2151_v63, %v2155_v1  ;;  %v2199_v56 = vld [vmem:[#allocation9 + $0x650] sm:$0xff] }
 0x22e   : > { %3845 = vmatprep.subr.bf16.mxu1 %v4256_v8  ;;  %v4312_v8 = vcombine.high %v2152_v5, %v2156_v6  ;;  %v2203_v11 = vld [vmem:[#allocation9 + $0x670] sm:$0xff] }
 0x230   : > { %3764 = vmatpush1.bf16.msra.mxu0 %v4253_v14  ;;  %v4311_v14 = vcombine.low %v2152_v5, %v2156_v6  ;;  %v2212_v5 = vld [vmem:[#allocation9 + $0x6b8] sm:$0xff]  ;;  %v4357_v6 = vcombine.low %v2199_v56, %v2203_v11 }
 0x231   : > { %3846 = vmatpush1.bf16.msra.mxu1 %v4255_v16  ;;  %3765 = vmatprep.subr.bf16.mxu0 %v4262_v17  ;;  %v4318_v16 = vcombine.high %v2159_v7, %v2163_v52  ;;  %v4320_v17 = vcombine.high %v2160_v13, %v2164_v53  ;;  %v2219_v7 = vld [vmem:[#allocation9 + $0x6f0] sm:$0xff]  ;;  %v2216_v52 = vld [vmem:[#allocation9 + $0x6d8] sm:$0xff] }
 0x232   : > { %3847 = vmatprep.subr.bf16.mxu1 %v4264_v18  ;;  %v2167_v18 = vld [vmem:[#allocation9 + $0x550] sm:$0xff] }
 0x233   : > { %v4325_v22 = vcombine.low %v2167_v18, %v2171_v54 }
 0x234   : > { %3766 = vmatpush1.bf16.msra.mxu0 %v4261_v4  ;;  %v4319_v4 = vcombine.low %v2160_v13, %v2164_v53  ;;  %v2220_v13 = vld [vmem:[#allocation9 + $0x6f8] sm:$0xff] }
 0x235   : > { %3848 = vmatpush1.bf16.msra.mxu1 %v4263_v23  ;;  %3767 = vmatprep.subr.bf16.mxu0 %v4270_v27  ;;  %v4326_v23 = vcombine.high %v2167_v18, %v2171_v54  ;;  %v4328_v27 = vcombine.high %v2168_v19, %v2172_v55  ;;  %v2227_v18 = vld [vmem:[#allocation9 + $0x730] sm:$0xff]  ;;  %v2224_v54 = vld [vmem:[#allocation9 + $0x718] sm:$0xff] }
 0x236   : > { %3849 = vmatprep.subr.bf16.mxu1 %v4272_v32  ;;  %v2175_v32 = vld [vmem:[#allocation9 + $0x590] sm:$0xff] }
 0x237   : > { %v4333_v30 = vcombine.low %v2175_v32, %v2179_v33 }
 0x238   : > { %3768 = vmatpush1.bf16.msra.mxu0 %v4269_v24  ;;  %v4327_v24 = vcombine.low %v2168_v19, %v2172_v55  ;;  %v2228_v19 = vld [vmem:[#allocation9 + $0x738] sm:$0xff] }
 0x239   : > { %3850 = vmatpush1.bf16.msra.mxu1 %v4271_v25  ;;  %3769 = vmatprep.subr.bf16.mxu0 %v4278_v26  ;;  %v4334_v25 = vcombine.high %v2175_v32, %v2179_v33  ;;  %v4336_v26 = vcombine.high %v2176_v43, %v2180_v44  ;;  %v2235_v32 = vld [vmem:[#allocation9 + $0x770] sm:$0xff]  ;;  %v2232_v33 = vld [vmem:[#allocation9 + $0x758] sm:$0xff] }
 0x23a   : > { %3851 = vmatprep.subr.bf16.mxu1 %v4280_v28  ;;  %v2183_v28 = vld [vmem:[#allocation9 + $0x5d0] sm:$0xff] }
 0x23b   : > { %v4341_v41 = vcombine.low %v2183_v28, %v2187_v0 }
 0x23c   : > { %3770 = vmatpush1.bf16.msra.mxu0 %v4277_v34  ;;  %v4335_v34 = vcombine.low %v2176_v43, %v2180_v44  ;;  %v2236_v43 = vld [vmem:[#allocation9 + $0x778] sm:$0xff] }
 0x23d   : > { %3852 = vmatpush1.bf16.msra.mxu1 %v4279_v35  ;;  %3780 = vmatprep.subr.bf16.mxu0 %v4286_v3  ;;  %v4342_v35 = vcombine.high %v2183_v28, %v2187_v0  ;;  %v4344_v3 = vcombine.high %v2184_v29, %v2188_v31  ;;  %v2243_v28 = vld [vmem:[#allocation9 + $0x7b0] sm:$0xff]  ;;  %v2240_v0 = vld [vmem:[#allocation9 + $0x798] sm:$0xff] }
 0x23e   : > { %3862 = vmatprep.subr.bf16.mxu1 %v4288_v36  ;;  %v2191_v36 = vld [vmem:[#allocation9 + $0x610] sm:$0xff]  ;;  %v2244_v29 = vld [vmem:[#allocation9 + $0x7b8] sm:$0xff] }
 0x23f   : > { %3772 = vmatmul.mubr.bf16.vlgmr.msra.gmra.mrb[68].mxu0 %v5131_v12 }
 0x240   : > { %3854 = vmatmul.mubr.bf16.vlgmr.msra.gmra.mrb[68].mxu1 %v5131_v12  ;;  %3781 = vmatpush1.bf16.msra.mxu0 %v4285_v40  ;;  %v4303_v12 = vcombine.low %v2144_v58, %v2148_v47  ;;  %v2196_v40 = vld [vmem:[#allocation9 + $0x638] sm:$0xff]  ;;  %v4349_v47 = vcombine.low %v2191_v36, %v2195_v37 }
 0x241   : > { %3812 = vmatprep.mubr.bf16.mxu0 %v5137_v15  ;;  %3863 = vmatpush1.bf16.msra.mxu1 %v4287_v48  ;;  %v4350_v48 = vcombine.high %v2191_v36, %v2195_v37  ;;  %v2204_v58 = vld [vmem:[#allocation9 + $0x678] sm:$0xff]  ;;  %v2251_v36 = vld [vmem:[#allocation9 + $0x7f0] sm:$0xff] }
 0x242   : > { %3894 = vmatprep.mubr.bf16.mxu1 %v5137_v15  ;;  %3782 = vmatprep.subr.bf16.mxu0 %v4294_v49  ;;  %v4309_v15 = vcombine.low %v2151_v63, %v2155_v1  ;;  %v4352_v49 = vcombine.high %v2192_v39, %v2196_v40  ;;  %v2211_v63 = vld [vmem:[#allocation9 + $0x6b0] sm:$0xff]  ;;  %v2208_v1 = vld [vmem:[#allocation9 + $0x698] sm:$0xff] }
 0x243   : > { %3864 = vmatprep.subr.bf16.mxu1 %v4296_v57  ;;  %v2200_v57 = vld [vmem:[#allocation9 + $0x658] sm:$0xff] }
 0x244   : > { %3783 = vmatpush1.bf16.msra.mxu0 %v4293_v59  ;;  %v4351_v59 = vcombine.low %v2192_v39, %v2196_v40  ;;  %v2248_v37 = vld [vmem:[#allocation9 + $0x7d8] sm:$0xff] }
 0x245   : > { %3865 = vmatpush1.bf16.msra.mxu1 %v4295_v60  ;;  %3784 = vmatprep.subr.bf16.mxu0 %v4302_v61  ;;  %v4358_v60 = vcombine.high %v2199_v56, %v2203_v11  ;;  %v4360_v61 = vcombine.high %v2200_v57, %v2204_v58  ;;  %v2252_v39 = vld [vmem:[#allocation9 + $0x7f8] sm:$0xff] }
 0x246   : > { %3866 = vmatprep.subr.bf16.mxu1 %v4304_v62  ;;  %v2207_v62 = vld [vmem:[#allocation9 + $0x690] sm:$0xff]  ;;  %v4407_v56 = vcombine.low %v2248_v37, %v2252_v39  ;;  %v2253_v11 = vld [vmem:[%s5213_s3] sm:$0xff] }
 0x247   : > { %v4365_v53 = vcombine.low %v2207_v62, %v2211_v63 }
 0x248   : > { %3785 = vmatpush1.bf16.msra.mxu0 %v4301_v9  ;;  %v4359_v9 = vcombine.low %v2200_v57, %v2204_v58  ;;  %v3538_v57 = vrot.slane %v2253_v11, %v4928_v45  ;;  %v3546_v58 = vrot.slane %v2253_v11, %v4931_v46 }
 0x249   : > { %3867 = vmatpush1.bf16.msra.mxu1 %v4303_v12  ;;  %3786 = vmatprep.subr.bf16.mxu0 %v4310_v10  ;;  %v4366_v12 = vcombine.high %v2207_v62, %v2211_v63  ;;  %v4368_v10 = vcombine.high %v2208_v1, %v2212_v5 }
 0x24a   : > { %3868 = vmatprep.subr.bf16.mxu1 %v4312_v8  ;;  %v2215_v8 = vld [vmem:[#allocation9 + $0x6d0] sm:$0xff] }
 0x24b   : > { %v4373_v55 = vcombine.low %v2215_v8, %v2219_v7 }
 0x24c   : > { %3787 = vmatpush1.bf16.msra.mxu0 %v4309_v15  ;;  %v4367_v15 = vcombine.low %v2208_v1, %v2212_v5 }
 0x24d   : > { %3869 = vmatpush1.bf16.msra.mxu1 %v4311_v14  ;;  %3788 = vmatprep.subr.bf16.mxu0 %v4318_v16  ;;  %v4374_v14 = vcombine.high %v2215_v8, %v2219_v7  ;;  %v4376_v16 = vcombine.high %v2216_v52, %v2220_v13 }
 0x24e   : > { %3870 = vmatprep.subr.bf16.mxu1 %v4320_v17  ;;  %v2223_v17 = vld [vmem:[#allocation9 + $0x710] sm:$0xff] }
 0x24f   : > { %v4381_v44 = vcombine.low %v2223_v17, %v2227_v18 }
 0x250   : > { %3789 = vmatpush1.bf16.msra.mxu0 %v4317_v20  ;;  %v4375_v20 = vcombine.low %v2216_v52, %v2220_v13 }
 0x251   : > { %3871 = vmatpush1.bf16.msra.mxu1 %v4319_v4  ;;  %3790 = vmatprep.subr.bf16.mxu0 %v4326_v23  ;;  %v4382_v4 = vcombine.high %v2223_v17, %v2227_v18  ;;  %v4384_v23 = vcombine.high %v2224_v54, %v2228_v19 }
 0x252   : > { %3872 = vmatprep.subr.bf16.mxu1 %v4328_v27  ;;  %v2231_v27 = vld [vmem:[#allocation9 + $0x750] sm:$0xff] }
 0x253   : > { %v4389_v31 = vcombine.low %v2231_v27, %v2235_v32 }
 0x254   : > { %3791 = vmatpush1.bf16.msra.mxu0 %v4325_v22  ;;  %v4383_v22 = vcombine.low %v2224_v54, %v2228_v19 }
 0x255   : > { %3873 = vmatpush1.bf16.msra.mxu1 %v4327_v24  ;;  %3792 = vmatprep.subr.bf16.mxu0 %v4334_v25  ;;  %v4390_v24 = vcombine.high %v2231_v27, %v2235_v32  ;;  %v4392_v25 = vcombine.high %v2232_v33, %v2236_v43 }
 0x256   : > { %3874 = vmatprep.subr.bf16.mxu1 %v4336_v26  ;;  %v2239_v26 = vld [vmem:[#allocation9 + $0x790] sm:$0xff] }
 0x257   : > { %v4397_v40 = vcombine.low %v2239_v26, %v2243_v28 }
 0x258   : > { %3793 = vmatpush1.bf16.msra.mxu0 %v4333_v30  ;;  %v4391_v30 = vcombine.low %v2232_v33, %v2236_v43  ;;  %v3553_v33 = vsub.s32 4, %v4925_v38  ;;  %v3561_v43 = vsub.s32 6, %v4925_v38 }
 0x259   : > { %3875 = vmatpush1.bf16.msra.mxu1 %v4335_v34  ;;  %3794 = vmatprep.subr.bf16.mxu0 %v4342_v35  ;;  %v4398_v34 = vcombine.high %v2239_v26, %v2243_v28  ;;  %v4400_v35 = vcombine.high %v2240_v0, %v2244_v29 }
 0x25a   : > { %3876 = vmatprep.subr.bf16.mxu1 %v4344_v3  ;;  %v2247_v3 = vld [vmem:[#allocation9 + $0x7d0] sm:$0xff] }
 0x25c   : > { %3795 = vmatpush1.bf16.msra.mxu0 %v4341_v41  ;;  %v4399_v41 = vcombine.low %v2240_v0, %v2244_v29 }
 0x25d   : > { %3877 = vmatpush1.bf16.msra.mxu1 %v4343_v42  ;;  %3796 = vmatprep.subr.bf16.mxu0 %v4350_v48  ;;  %v4406_v42 = vcombine.high %v2247_v3, %v2251_v36  ;;  %v4408_v48 = vcombine.high %v2248_v37, %v2252_v39 }
 0x25e   : > { %3878 = vmatprep.subr.bf16.mxu1 %v4352_v49  ;;  %v4405_v49 = vcombine.low %v2247_v3, %v2251_v36 }
 0x260   : > { %3797 = vmatpush1.bf16.msra.mxu0 %v4349_v47  ;;  %v5169_v47 = vld [vmem:[%s5214_s4] sm:$0xff] }
 0x261   : > { %3879 = vmatpush1.bf16.msra.mxu1 %v4351_v59  ;;  %3798 = vmatprep.subr.bf16.mxu0 %v4358_v60  ;;  %v3542_v59 = vrot.slane %v2253_v11, %v4937_v50  ;;  %v3550_v60 = vrot.slane %v2253_v11, %v4940_v51  ;;  %v3916_v63 = vrot.slane %v5169_v47, %v4928_v45 }
 0x262   : > { %3880 = vmatprep.subr.bf16.mxu1 %v4360_v61  ;;  %v3928_v17 = vrot.slane %v5169_v47, %v4940_v51  ;;  %v3557_v51 = vsub.s32 5, %v4925_v38  ;;  %v3932_v29 = vrot.slane %v5169_v47, %v3553_v33 }
 0x264   : > { %3799 = vmatpush1.bf16.msra.mxu0 %v4357_v6  ;;  %v3936_v3 = vrot.slane %v5169_v47, %v3557_v51 }
 0x265   : > { %3881 = vmatpush1.bf16.msra.mxu1 %v4359_v9  ;;  %3800 = vmatprep.subr.bf16.mxu0 %v4366_v12  ;;  %v3924_v9 = vrot.slane %v5169_v47, %v4931_v46 }
 0x266   : > { %3882 = vmatprep.subr.bf16.mxu1 %v4368_v10  ;;  %v3920_v10 = vrot.slane %v5169_v47, %v4937_v50 }
 0x268   : > { %3801 = vmatpush1.bf16.msra.mxu0 %v4365_v53 }
 0x269   : > { %3883 = vmatpush1.bf16.msra.mxu1 %v4367_v15  ;;  %3802 = vmatprep.subr.bf16.mxu0 %v4374_v14 }
 0x26a   : > { %3884 = vmatprep.subr.bf16.mxu1 %v4376_v16 }
 0x26c   : > { %3803 = vmatpush1.bf16.msra.mxu0 %v4373_v55 }
 0x26d   : > { %3885 = vmatpush1.bf16.msra.mxu1 %v4375_v20  ;;  %3804 = vmatprep.subr.bf16.mxu0 %v4382_v4 }
 0x26e   : > { %3886 = vmatprep.subr.bf16.mxu1 %v4384_v23 }
 0x270   : > { %3805 = vmatpush1.bf16.msra.mxu0 %v4381_v44  ;;  %v3565_v44 = vsub.s32 7, %v4925_v38 }
 0x271   : > { %3887 = vmatpush1.bf16.msra.mxu1 %v4383_v22  ;;  %3806 = vmatprep.subr.bf16.mxu0 %v4390_v24  ;;  %v3554_v22 = vrot.slane %v2253_v11, %v3553_v33  ;;  %v3562_v24 = vrot.slane %v2253_v11, %v3561_v43 }
 0x272   : > { %3888 = vmatprep.subr.bf16.mxu1 %v4392_v25  ;;  %v3558_v25 = vrot.slane %v2253_v11, %v3557_v51  ;;  %v3566_v26 = vrot.slane %v2253_v11, %v3565_v44 }
 0x274   : > { %3807 = vmatpush1.bf16.msra.mxu0 %v4389_v31 }
 0x275   : > { %3889 = vmatpush1.bf16.msra.mxu1 %v4391_v30  ;;  %3808 = vmatprep.subr.bf16.mxu0 %v4398_v34 }
 0x276   : > { %3890 = vmatprep.subr.bf16.mxu1 %v4400_v35 }
 0x278   : > { %3809 = vmatpush1.bf16.msra.mxu0 %v4397_v40  ;;  %v3940_v40 = vrot.slane %v5169_v47, %v3561_v43 }
 0x279   : > { %3891 = vmatpush1.bf16.msra.mxu1 %v4399_v41  ;;  %3810 = vmatprep.subr.bf16.mxu0 %v4406_v42 }
 0x27a   : > { %3892 = vmatprep.subr.bf16.mxu1 %v4408_v48 }
 0x27c   : > { %3811 = vmatpush1.bf16.msra.mxu0 %v4405_v49 }
 0x27d   : > { %3893 = vmatpush1.bf16.msra.mxu1 %v4407_v56 }
 0x27f   : > { %3813 = vmatmul.mubr.bf16.vlgmr.msra.gmra.mrb[68].mxu0 %v5149_v21 }
 0x280   : > { %3895 = vmatmul.mubr.bf16.vlgmr.msra.gmra.mrb[68].mxu1 %v5149_v21 }
 0x2d2   : > { %v3650_v61 = vpop.f32.mrb[64].mxu0  ;;  %v3732_v62 = vpop.f32.mrb[64].mxu1 }
 0x2d3   : > { %v4412_v21 = vadd.f32 %v3650_v61, %v3538_v57  ;;  %v4414_v1 = vadd.f32 %v3732_v62, %v3546_v58  ;;  %v3652_v5 = vpop.f32.mrb[65].mxu0  ;;  %v3734_v6 = vpop.f32.mrb[65].mxu1  ;;  %v3944_v58 = vrot.slane %v5169_v47, %v3565_v44 }
 0x2d4   : > { %v4413_v12 = vadd.f32 %v3652_v5, %v3542_v59  ;;  %v4415_v8 = vadd.f32 %v3734_v6, %v3550_v60  ;;  %v3654_v7 = vpop.f32.mrb[66].mxu0  ;;  %v3736_v52 = vpop.f32.mrb[66].mxu1 }
 0x2d5   : > { %v3903_v13 = vmax.f32 %v4412_v21, 0.0  ;;  %v3905_v53 = vmax.f32 %v4414_v1, 0.0  ;;  %v3655_v15 = vpop.f32.mrb[67].mxu0  ;;  %v3737_v14 = vpop.f32.mrb[67].mxu1 }
 0x2d6   : > { %v3904_v16 = vmax.f32 %v4413_v12, 0.0  ;;  %v3906_v45 = vmax.f32 %v4415_v8, 0.0 }
 0x2d7   : > { %v3953_v18 = vmul.f32 %v3916_v63, %v3903_v13  ;;  %v3955_v54 = vmul.f32 %v3924_v9, %v3905_v53 }
 0x2d8   : > { %v3954_v46 = vmul.f32 %v3920_v10, %v3904_v16  ;;  %v3956_v55 = vmul.f32 %v3928_v17, %v3906_v45  ;;  %v3979_v10 = vld [vmem:[#allocation8] sm:$0x1] }
 0x2d9   : > { %v3962_v19 = vsel %vm3961_vm3, %v3953_v18, 0.0  ;;  %v3965_v4 = vsel %vm3961_vm3, %v3955_v54, 0.0 }
 0x2da   : > { %v3963_v50 = vsel %vm3961_vm3, %v3954_v46, 0.0  ;;  %v3967_v27 = vsel %vm3961_vm3, %v3956_v55, 0.0 }
 0x2db   : > { %v3964_v20 = vadd.f32 %v3963_v50, %v3962_v19 }
 0x2dd   : > { %v3966_v23 = vadd.f32 %v3965_v4, %v3964_v20 }
 0x2df   : > { %v3968_v32 = vadd.f32 %v3967_v27, %v3966_v23 }
 0x352   : > { %v3814_v28 = vpop.f32.mrb[68].mxu0 }
 0x353   : > { %v4416_v0 = vadd.f32 %v3814_v28, %v3554_v22  ;;  %v3896_v31 = vpop.f32.mrb[68].mxu1  ;;  %v3816_v30 = vpop.f32.mrb[69].mxu0 }
 0x354   : > { %v4418_v34 = vadd.f32 %v3896_v31, %v3562_v24  ;;  %v4417_v35 = vadd.f32 %v3816_v30, %v3558_v25  ;;  %v3898_v36 = vpop.f32.mrb[69].mxu1  ;;  %v3818_v37 = vpop.f32.mrb[70].mxu0 }
 0x355   : > { %v3907_v39 = vmax.f32 %v4416_v0, 0.0  ;;  %v4419_v38 = vadd.f32 %v3898_v36, %v3566_v26  ;;  %v3900_v41 = vpop.f32.mrb[70].mxu1  ;;  %v3819_v42 = vpop.f32.mrb[71].mxu0 }
 0x356   : > { %v3909_v48 = vmax.f32 %v4418_v34, 0.0  ;;  %v3908_v49 = vmax.f32 %v4417_v35, 0.0  ;;  %v3901_v56 = vpop.f32.mrb[71].mxu1 }
 0x357   : > { %v3957_v11 = vmul.f32 %v3932_v29, %v3907_v39  ;;  %v3910_v57 = vmax.f32 %v4419_v38, 0.0 }
 0x358   : > { %v3958_v59 = vmul.f32 %v3936_v3, %v3908_v49  ;;  %v3959_v61 = vmul.f32 %v3940_v40, %v3909_v48 }
 0x359   : > { %v3969_v60 = vsel %vm3961_vm3, %v3957_v11, 0.0  ;;  %v3960_v63 = vmul.f32 %v3944_v58, %v3910_v57 }
 0x35a   : > { %v3970_v62 = vadd.f32 %v3969_v60, %v3968_v32  ;;  %v3971_v21 = vsel %vm3961_vm3, %v3958_v59, 0.0  ;;  %v3973_v5 = vsel %vm3961_vm3, %v3959_v61, 0.0 }
 0x35b   : > { %v3975_v9 = vsel %vm3961_vm3, %v3960_v63, 0.0 }
 0x35c   : > { %v3972_v1 = vadd.f32 %v3971_v21, %v3970_v62 }
 0x35e   : > { %v3974_v6 = vadd.f32 %v3973_v5, %v3972_v1 }
 0x360   : > { %v3976_v12 = vadd.f32 %v3975_v9, %v3974_v6 }
 0x362   : > { %3977 = vadd.xlane.f32.xlu0 %v3976_v12 }
 0x3ef   : > { %v3978_v47 = vpop.xlane.xlu0 %3977 }
 0x3f0   : > { %v3980_v8 = vadd.f32 %v3979_v10, %v3978_v47 }
 0x3f2   : > { %3982 = vst.msk [vmem:[%s325_s17] sm:$0x1] %vm3981_vm4, %v3980_v8 }
 0x3f3 PF: > { %s26_s11 = sadd.s32 1, %s4558_s11   ;;  %s5229_s9 = smov %s4554_s10 }
 0x3f4   : > { %p23_p4 = scmp.ge.s32.totalorder %s26_s11, 4   ;;  %s5230_s10 = smov %s5232_s7 }
 0x3f6   :  { %25 = sbr.rel (!%p23_p4) target bundleno = 5 (0x5), region = 153 }
 0x3fd   :  { %4000 = vsyncpa [#allocation10], 1 }
 0x3fe   :  { %4002 = vsyncpa [#allocation10 + $0x1], 1 }

</bundles_post_ra>
